<compile_context>
chip_gen: v6e
topology: v6e:2x2x1
jax: 0.10.0
libtpu: 0.0.40
codegen_flags: <defaults>
</compile_context>

<pallas_src>
import jax
import jax.numpy as jnp
from jax.experimental import pallas as pl
from jax.experimental.pallas import tpu as pltpu


def _round_up(x, m):
    return (x + m - 1) // m * m


K2 = 1024     # fc2 input dim padded 1000 -> 1024 (clean multiple of 128)
NOUT = 128    # fc3 output dim padded 3 -> 128 lanes (dense, unmasked vst)


# ----------------------------------------------------------------------------
# Fused MLP-head Pallas kernel
# ----------------------------------------------------------------------------
# Per grid step (batch tile of TB rows), all operands VMEM-resident:
#   feat1 : (TB, 512)   bf16   bert pooler stand-in
#   feat2 : (TB, 1024)  bf16   resnet logits stand-in (cols 1000..1023 == 0)
#   w1    : (512, 256)  bf16,  b1  : (1, 256) f32
#   w2    : (1024, 256) bf16,  b2  : (1, 256) f32   (rows 1000..1023 == 0)
#   w3a_t : (256, 256)  bf16   top half of fc3[1].weight.T (acts on out1)
#   w3a_b : (256, 256)  bf16   bottom half of fc3[1].weight.T (acts on out2)
#   b3a   : (1, 256) f32
#   w3b   : (256, 128)  bf16 (zero-padded 3->128), b3b : (1, 128) f32
# Output:
#   out   : (TB, 128) bf16  (only columns 0..2 are meaningful)
def fused_head_kernel(feat1_ref, feat2_ref,
                      w1_ref, b1_ref,
                      w2_ref, b2_ref,
                      w3a_t_ref, w3a_b_ref, b3a_ref,
                      w3b_ref, b3b_ref,
                      out_ref):
    f1 = feat1_ref[...]                       # (TB, 512)  bf16
    f2 = feat2_ref[...]                       # (TB, 1024) bf16

    # fc1: Dropout(eval)=id -> Linear(512,256) -> ReLU.
    # bf16 MXU operands, f32 accumulation; bias/ReLU stay f32.
    h1 = jnp.dot(f1, w1_ref[...], preferred_element_type=jnp.float32) + b1_ref[...]
    h1 = jnp.maximum(h1, 0.0)

    # fc2: Dropout(eval)=id -> Linear(1000,256) -> ReLU
    # (K padded to 1024 with zero input columns and zero weight rows ->
    #  result identical to the 1000-wide Linear).
    h2 = jnp.dot(f2, w2_ref[...], preferred_element_type=jnp.float32) + b2_ref[...]
    h2 = jnp.maximum(h2, 0.0)

    # fc3 first Linear(512,256) on cat(h1, h2): split the weight instead of
    # materializing the concat -> cat @ W = h1 @ W_top + h2 @ W_bot
    h3 = (jnp.dot(h1.astype(jnp.bfloat16), w3a_t_ref[...],
                  preferred_element_type=jnp.float32)
          + jnp.dot(h2.astype(jnp.bfloat16), w3a_b_ref[...],
                    preferred_element_type=jnp.float32)
          + b3a_ref[...])
    h3 = jnp.maximum(h3, 0.0)

    # fc3 second Linear(256,3), padded to 128 output lanes for dense stores.
    out = jnp.dot(h3.astype(jnp.bfloat16), w3b_ref[...],
                  preferred_element_type=jnp.float32) + b3b_ref[...]
    out_ref[...] = out.astype(out_ref.dtype)


def _choose_tb(B):
    # Largest batch tile <= 512 (amortizes the ~0.35 us per-step overhead and
    # fills the MXU M dimension) while keeping >= 2 grid steps whenever B
    # allows, so dimension_semantics=("parallel",) can shard the batch across
    # v7x's two TensorCores. 512 also stays comfortably inside v5e's 16 MiB
    # scoped-VMEM default with bf16 features.
    for tb in (512, 256, 128, 64, 32, 16, 8):
        if B >= 2 * tb:
            return tb
    return _round_up(B, 8)


def fused_head(feat1, feat2, params):
    """feat1: (B, 512) bf16, feat2: (B, 1024) bf16 (cols 1000..1023 zero)."""
    B = feat1.shape[0]

    w1, b1 = params["w1"], params["b1"]
    w2, b2 = params["w2"], params["b2"]
    w3a_t, w3a_b, b3a = params["w3a_t"], params["w3a_b"], params["b3a"]
    w3b, b3b = params["w3b"], params["b3b"]

    # ---- batch tiling ------------------------------------------------------
    TB = _choose_tb(B)
    Bp = _round_up(B, TB)
    if Bp != B:
        feat1 = jnp.pad(feat1, ((0, Bp - B), (0, 0)))
        feat2 = jnp.pad(feat2, ((0, Bp - B), (0, 0)))
    grid = (Bp // TB,)

    # Features are tiled over the batch grid; weights/biases use a constant
    # index_map so they are DMA'd once and stay VMEM-resident across steps.
    feat_spec1 = pl.BlockSpec((TB, 512), lambda i: (i, 0))
    feat_spec2 = pl.BlockSpec((TB, K2), lambda i: (i, 0))
    const = lambda shape: pl.BlockSpec(shape, lambda i: (0, 0))
    in_specs = [
        feat_spec1, feat_spec2,
        const(w1.shape), const(b1.shape),
        const(w2.shape), const(b2.shape),
        const(w3a_t.shape), const(w3a_b.shape), const(b3a.shape),
        const(w3b.shape), const(b3b.shape),
    ]
    out_specs = pl.BlockSpec((TB, NOUT), lambda i: (i, 0))

    # Advisory cost estimate (bf16 features / weights / output).
    flops = 2 * Bp * (512 * 256 + K2 * 256 + 2 * 256 * 256 + 256 * NOUT)
    weight_bytes = 2 * (512 * 256 + K2 * 256 + 2 * 256 * 256 + 256 * NOUT)
    bias_bytes = 4 * (3 * 256 + NOUT)
    act_bytes = 2 * Bp * (512 + K2 + NOUT)
    cost = pl.CostEstimate(flops=flops, transcendentals=0,
                           bytes_accessed=weight_bytes + bias_bytes + act_bytes)

    out_p = pl.pallas_call(
        fused_head_kernel,
        out_shape=jax.ShapeDtypeStruct((Bp, NOUT), jnp.bfloat16),
        grid_spec=pltpu.PrefetchScalarGridSpec(
            num_scalar_prefetch=0,
            grid=grid,
            in_specs=in_specs,
            out_specs=out_specs,
        ),
        compiler_params=pltpu.CompilerParams(
            dimension_semantics=("parallel",),   # shard batch across v7x TCs
        ),
        cost_estimate=cost,
    )(feat1, feat2, w1, b1, w2, b2, w3a_t, w3a_b, b3a, w3b, b3b)

    # Strip batch padding + the 128-lane output padding; return f32 like the
    # PyTorch head.
    return out_p[:B, :3].astype(jnp.float32)


# ----------------------------------------------------------------------------
# Deterministic stand-in "backbones" (plain JAX glue)
# ----------------------------------------------------------------------------
# TODO(synk): pretrained BERT-small and ResNet50 backbones are not translatable
#             here (no checkpoint loads); they are replaced by deterministic
#             stand-in feature extractors producing the exact shapes the head
#             consumes.
def bert_standin(input_ids, token_type_ids, attention_mask, p):
    # masked mean of (word + token_type) embeddings, then tanh "pooler".
    emb = p["word_emb"][input_ids] + p["type_emb"][token_type_ids]   # (B, S, 512)
    mask = attention_mask.astype(jnp.float32)[..., None]             # (B, S, 1)
    pooled = (emb * mask).sum(axis=1) / jnp.maximum(mask.sum(axis=1), 1.0)
    return jnp.tanh(pooled).astype(jnp.bfloat16)                     # (B, 512) bf16


def resnet_standin(pic, p):
    # global average pool over H, W (NCHW) -> linear to 1024 "logits"
    # (res_w is padded once at construction, so columns 1000..1023 are zero
    #  and no per-forward activation pad is needed).
    gap = pic.mean(axis=(2, 3))                                      # (B, C)
    logits = gap @ p["res_w"] + p["res_b"]                           # (B, 1024)
    return logits.astype(jnp.bfloat16)


# ----------------------------------------------------------------------------
# Parameter construction (deterministic, pre-padded / pre-cast)
# ----------------------------------------------------------------------------
def make_params(key, in_channels=3, vocab=1000, seq_hidden=512):
    ks = jax.random.split(key, 12)
    s = lambda k, shape, scale: (scale * jax.random.normal(k, shape)).astype(jnp.float32)
    bf16 = jnp.bfloat16

    # ResNet stand-in emits K2=1024-wide logits directly (last 24 cols zero).
    res_w = jnp.pad(s(ks[2], (in_channels, 1000), 0.1), ((0, 0), (0, K2 - 1000)))
    res_b = jnp.pad(s(ks[3], (1000,), 0.01), (0, K2 - 1000))
    # fc2: Linear(1000, 256) with K zero-padded to 1024 (extra rows zero).
    w2 = jnp.pad(s(ks[6], (1000, 256), 0.03), ((0, K2 - 1000), (0, 0)))
    # fc3 second Linear(256, 3) padded to 128 output lanes (extra cols zero).
    w3b = jnp.pad(s(ks[11], (256, 3), 0.06), ((0, 0), (0, NOUT - 3)))
    b3b = jnp.zeros((1, NOUT), jnp.float32)

    params = {
        # stand-in backbones (f32 compute, bf16 features emitted downstream)
        "word_emb": s(ks[0], (vocab, seq_hidden), 0.02),
        "type_emb": s(ks[1], (2, seq_hidden), 0.02),
        "res_w":    res_w,
        "res_b":    res_b,
        # MLP head: bf16 weights (MXU-native, halves weight DMA), f32 biases.
        # fc1: Linear(512, 256)
        "w1": s(ks[4], (512, 256), 0.04).astype(bf16),
        "b1": s(ks[5], (1, 256), 0.01),
        # fc2: Linear(1000, 256), K padded to 1024
        "w2": w2.astype(bf16),
        "b2": s(ks[7], (1, 256), 0.01),
        # fc3: Linear(512, 256) split into top/bottom halves of W^T (acting on
        # out1 / out2 respectively), then Linear(256, 3) padded to 128.
        "w3a_t": s(ks[8], (256, 256), 0.06).astype(bf16),
        "w3a_b": s(ks[9], (256, 256), 0.06).astype(bf16),
        "b3a":   s(ks[10], (1, 256), 0.01),
        "w3b":   w3b.astype(bf16),
        "b3b":   b3b,
    }
    return params


def my_model_forward(pic, input_ids, token_type_ids, attention_mask, params):
    feat1 = bert_standin(input_ids, token_type_ids, attention_mask, params)  # (B, 512)  bf16
    feat2 = resnet_standin(pic, params)                                      # (B, 1024) bf16
    return fused_head(feat1, feat2, params)                                  # (B, 3)    f32


if __name__ == "__main__":
    key = jax.random.PRNGKey(0)
    k_pic, k_ids, k_mask, k_par = jax.random.split(key, 4)

    B, C, H, W = 2, 3, 16, 16
    S = 8
    pic = jax.random.normal(k_pic, (B, C, H, W), dtype=jnp.float32)          # NCHW
    input_ids = jax.random.randint(k_ids, (B, S), 0, 1000, dtype=jnp.int32)
    token_type_ids = jnp.zeros((B, S), dtype=jnp.int32)
    attention_mask = jnp.ones((B, S), dtype=jnp.int32)

    params = make_params(k_par, in_channels=C)

    fwd = jax.jit(my_model_forward)   # fuses the bf16 casts into the producers
    out = fwd(pic, input_ids, token_type_ids, attention_mask, params)
    out = jax.block_until_ready(out)
    assert out.shape == (B, 3) and out.dtype == jnp.float32
    print("KERNEL_OK")
</pallas_src>

<mosaic_0001>
module attributes {stable_mosaic.version = 11 : i64} {
  func.func @fused_head_kernel(%arg0: i32, %arg1: memref<8x512xbf16, #tpu.memory_space<vmem>>, %arg2: memref<8x1024xbf16, #tpu.memory_space<vmem>>, %arg3: memref<512x256xbf16, #tpu.memory_space<vmem>>, %arg4: memref<1x256xf32, #tpu.memory_space<vmem>>, %arg5: memref<1024x256xbf16, #tpu.memory_space<vmem>>, %arg6: memref<1x256xf32, #tpu.memory_space<vmem>>, %arg7: memref<256x256xbf16, #tpu.memory_space<vmem>>, %arg8: memref<256x256xbf16, #tpu.memory_space<vmem>>, %arg9: memref<1x256xf32, #tpu.memory_space<vmem>>, %arg10: memref<256x128xbf16, #tpu.memory_space<vmem>>, %arg11: memref<1x128xf32, #tpu.memory_space<vmem>>, %arg12: memref<8x128xbf16, #tpu.memory_space<vmem>>) attributes {dimension_semantics = [#tpu.dimension_semantics<parallel>], iteration_bounds = array<i64: 1>, scalar_prefetch = 0 : i64, scratch_operands = 0 : i64, tpu.core_type = #tpu.core_type<tc>, window_params = [{transform_indices = @transform_0, window_bounds = array<i64: 8, 512>}, {transform_indices = @transform_1, window_bounds = array<i64: 8, 1024>}, {pipeline_mode = #tpu.pipeline_mode<synchronous>, transform_indices = @transform_2, window_bounds = array<i64: 512, 256>}, {pipeline_mode = #tpu.pipeline_mode<synchronous>, transform_indices = @transform_3, window_bounds = array<i64: 1, 256>}, {pipeline_mode = #tpu.pipeline_mode<synchronous>, transform_indices = @transform_4, window_bounds = array<i64: 1024, 256>}, {pipeline_mode = #tpu.pipeline_mode<synchronous>, transform_indices = @transform_5, window_bounds = array<i64: 1, 256>}, {pipeline_mode = #tpu.pipeline_mode<synchronous>, transform_indices = @transform_6, window_bounds = array<i64: 256, 256>}, {pipeline_mode = #tpu.pipeline_mode<synchronous>, transform_indices = @transform_7, window_bounds = array<i64: 256, 256>}, {pipeline_mode = #tpu.pipeline_mode<synchronous>, transform_indices = @transform_8, window_bounds = array<i64: 1, 256>}, {pipeline_mode = #tpu.pipeline_mode<synchronous>, transform_indices = @transform_9, window_bounds = array<i64: 256, 128>}, {pipeline_mode = #tpu.pipeline_mode<synchronous>, transform_indices = @transform_10, window_bounds = array<i64: 1, 128>}, {transform_indices = @transform_11, window_bounds = array<i64: 8, 128>}]} {
    %c0 = arith.constant 0 : index
    %c0_0 = arith.constant 0 : index
    %0 = vector.load %arg1[%c0, %c0_0] : memref<8x512xbf16, #tpu.memory_space<vmem>>, vector<8x512xbf16>
    %c0_1 = arith.constant 0 : index
    %c0_2 = arith.constant 0 : index
    %1 = vector.load %arg2[%c0_1, %c0_2] : memref<8x1024xbf16, #tpu.memory_space<vmem>>, vector<8x1024xbf16>
    %c0_3 = arith.constant 0 : index
    %c0_4 = arith.constant 0 : index
    %2 = vector.load %arg3[%c0_3, %c0_4] : memref<512x256xbf16, #tpu.memory_space<vmem>>, vector<512x256xbf16>
    %cst = arith.constant dense<0.000000e+00> : vector<8x256xf32>
    %3 = tpu.matmul %0, %2, %cst {dimension_numbers = #tpu.dot_dimension_numbers<[1], [0], [0], [1], [0, 0, 1, 1], [], []>} : vector<8x512xbf16>, vector<512x256xbf16>, vector<8x256xf32> -> vector<8x256xf32>
    %c0_5 = arith.constant 0 : index
    %c0_6 = arith.constant 0 : index
    %4 = vector.load %arg4[%c0_5, %c0_6] : memref<1x256xf32, #tpu.memory_space<vmem>>, vector<1x256xf32>
    %5 = vector.broadcast %4 : vector<1x256xf32> to vector<8x256xf32>
    %6 = arith.addf %3, %5 : vector<8x256xf32>
    %cst_7 = arith.constant 0.000000e+00 : f32
    %7 = vector.broadcast %cst_7 : f32 to vector<8x256xf32>
    %8 = arith.maximumf %6, %7 : vector<8x256xf32>
    %c0_8 = arith.constant 0 : index
    %c0_9 = arith.constant 0 : index
    %9 = vector.load %arg5[%c0_8, %c0_9] : memref<1024x256xbf16, #tpu.memory_space<vmem>>, vector<1024x256xbf16>
    %cst_10 = arith.constant dense<0.000000e+00> : vector<8x256xf32>
    %10 = tpu.matmul %1, %9, %cst_10 {dimension_numbers = #tpu.dot_dimension_numbers<[1], [0], [0], [1], [0, 0, 1, 1], [], []>} : vector<8x1024xbf16>, vector<1024x256xbf16>, vector<8x256xf32> -> vector<8x256xf32>
    %c0_11 = arith.constant 0 : index
    %c0_12 = arith.constant 0 : index
    %11 = vector.load %arg6[%c0_11, %c0_12] : memref<1x256xf32, #tpu.memory_space<vmem>>, vector<1x256xf32>
    %12 = vector.broadcast %11 : vector<1x256xf32> to vector<8x256xf32>
    %13 = arith.addf %10, %12 : vector<8x256xf32>
    %cst_13 = arith.constant 0.000000e+00 : f32
    %14 = vector.broadcast %cst_13 : f32 to vector<8x256xf32>
    %15 = arith.maximumf %13, %14 : vector<8x256xf32>
    %16 = arith.truncf %8 : vector<8x256xf32> to vector<8x256xbf16>
    %c0_14 = arith.constant 0 : index
    %c0_15 = arith.constant 0 : index
    %17 = vector.load %arg7[%c0_14, %c0_15] : memref<256x256xbf16, #tpu.memory_space<vmem>>, vector<256x256xbf16>
    %cst_16 = arith.constant dense<0.000000e+00> : vector<8x256xf32>
    %18 = tpu.matmul %16, %17, %cst_16 {dimension_numbers = #tpu.dot_dimension_numbers<[1], [0], [0], [1], [0, 0, 1, 1], [], []>} : vector<8x256xbf16>, vector<256x256xbf16>, vector<8x256xf32> -> vector<8x256xf32>
    %19 = arith.truncf %15 : vector<8x256xf32> to vector<8x256xbf16>
    %c0_17 = arith.constant 0 : index
    %c0_18 = arith.constant 0 : index
    %20 = vector.load %arg8[%c0_17, %c0_18] : memref<256x256xbf16, #tpu.memory_space<vmem>>, vector<256x256xbf16>
    %cst_19 = arith.constant dense<0.000000e+00> : vector<8x256xf32>
    %21 = tpu.matmul %19, %20, %cst_19 {dimension_numbers = #tpu.dot_dimension_numbers<[1], [0], [0], [1], [0, 0, 1, 1], [], []>} : vector<8x256xbf16>, vector<256x256xbf16>, vector<8x256xf32> -> vector<8x256xf32>
    %22 = arith.addf %18, %21 : vector<8x256xf32>
    %c0_20 = arith.constant 0 : index
    %c0_21 = arith.constant 0 : index
    %23 = vector.load %arg9[%c0_20, %c0_21] : memref<1x256xf32, #tpu.memory_space<vmem>>, vector<1x256xf32>
    %24 = vector.broadcast %23 : vector<1x256xf32> to vector<8x256xf32>
    %25 = arith.addf %22, %24 : vector<8x256xf32>
    %cst_22 = arith.constant 0.000000e+00 : f32
    %26 = vector.broadcast %cst_22 : f32 to vector<8x256xf32>
    %27 = arith.maximumf %25, %26 : vector<8x256xf32>
    %28 = arith.truncf %27 : vector<8x256xf32> to vector<8x256xbf16>
    %c0_23 = arith.constant 0 : index
    %c0_24 = arith.constant 0 : index
    %29 = vector.load %arg10[%c0_23, %c0_24] : memref<256x128xbf16, #tpu.memory_space<vmem>>, vector<256x128xbf16>
    %cst_25 = arith.constant dense<0.000000e+00> : vector<8x128xf32>
    %30 = tpu.matmul %28, %29, %cst_25 {dimension_numbers = #tpu.dot_dimension_numbers<[1], [0], [0], [1], [0, 0, 1, 1], [], []>} : vector<8x256xbf16>, vector<256x128xbf16>, vector<8x128xf32> -> vector<8x128xf32>
    %c0_26 = arith.constant 0 : index
    %c0_27 = arith.constant 0 : index
    %31 = vector.load %arg11[%c0_26, %c0_27] : memref<1x128xf32, #tpu.memory_space<vmem>>, vector<1x128xf32>
    %32 = vector.broadcast %31 : vector<1x128xf32> to vector<8x128xf32>
    %33 = arith.addf %30, %32 : vector<8x128xf32>
    %34 = arith.truncf %33 : vector<8x128xf32> to vector<8x128xbf16>
    %c0_28 = arith.constant 0 : index
    %c0_29 = arith.constant 0 : index
    %35 = vector.load %arg12[%c0_28, %c0_29] : memref<8x128xbf16, #tpu.memory_space<vmem>>, vector<8x128xbf16>
    tpu.vector_store %arg12[%c0_28, %c0_29], %34 {strides = array<i32>} : memref<8x128xbf16, #tpu.memory_space<vmem>>, vector<8x128xbf16>,
    return
  }
  func.func @transform_0(%arg0: i32) -> (i32, i32) {
    %c0_i32 = arith.constant 0 : i32
    %c0_i32_0 = arith.constant 0 : i32
    return %arg0, %c0_i32 : i32, i32
  }
  func.func @transform_1(%arg0: i32) -> (i32, i32) {
    %c0_i32 = arith.constant 0 : i32
    %c0_i32_0 = arith.constant 0 : i32
    return %arg0, %c0_i32 : i32, i32
  }
  func.func @transform_2(%arg0: i32) -> (i32, i32) {
    %c0_i32 = arith.constant 0 : i32
    %c0_i32_0 = arith.constant 0 : i32
    %c0_i32_1 = arith.constant 0 : i32
    return %c0_i32, %c0_i32_0 : i32, i32
  }
  func.func @transform_3(%arg0: i32) -> (i32, i32) {
    %c0_i32 = arith.constant 0 : i32
    %c0_i32_0 = arith.constant 0 : i32
    %c0_i32_1 = arith.constant 0 : i32
    return %c0_i32, %c0_i32_0 : i32, i32
  }
  func.func @transform_4(%arg0: i32) -> (i32, i32) {
    %c0_i32 = arith.constant 0 : i32
    %c0_i32_0 = arith.constant 0 : i32
    %c0_i32_1 = arith.constant 0 : i32
    return %c0_i32, %c0_i32_0 : i32, i32
  }
  func.func @transform_5(%arg0: i32) -> (i32, i32) {
    %c0_i32 = arith.constant 0 : i32
    %c0_i32_0 = arith.constant 0 : i32
    %c0_i32_1 = arith.constant 0 : i32
    return %c0_i32, %c0_i32_0 : i32, i32
  }
  func.func @transform_6(%arg0: i32) -> (i32, i32) {
    %c0_i32 = arith.constant 0 : i32
    %c0_i32_0 = arith.constant 0 : i32
    %c0_i32_1 = arith.constant 0 : i32
    return %c0_i32, %c0_i32_0 : i32, i32
  }
  func.func @transform_7(%arg0: i32) -> (i32, i32) {
    %c0_i32 = arith.constant 0 : i32
    %c0_i32_0 = arith.constant 0 : i32
    %c0_i32_1 = arith.constant 0 : i32
    return %c0_i32, %c0_i32_0 : i32, i32
  }
  func.func @transform_8(%arg0: i32) -> (i32, i32) {
    %c0_i32 = arith.constant 0 : i32
    %c0_i32_0 = arith.constant 0 : i32
    %c0_i32_1 = arith.constant 0 : i32
    return %c0_i32, %c0_i32_0 : i32, i32
  }
  func.func @transform_9(%arg0: i32) -> (i32, i32) {
    %c0_i32 = arith.constant 0 : i32
    %c0_i32_0 = arith.constant 0 : i32
    %c0_i32_1 = arith.constant 0 : i32
    return %c0_i32, %c0_i32_0 : i32, i32
  }
  func.func @transform_10(%arg0: i32) -> (i32, i32) {
    %c0_i32 = arith.constant 0 : i32
    %c0_i32_0 = arith.constant 0 : i32
    %c0_i32_1 = arith.constant 0 : i32
    return %c0_i32, %c0_i32_0 : i32, i32
  }
  func.func @transform_11(%arg0: i32) -> (i32, i32) {
    %c0_i32 = arith.constant 0 : i32
    %c0_i32_0 = arith.constant 0 : i32
    return %arg0, %c0_i32 : i32, i32
  }
}

</mosaic_0001>

<bundles_post_ra>
// kernel: my_model_forward.1
= control target key start
LH: loop header
LB: loop body
LE: loop exit
PB: predicated region body
PF: predicated region fallthrough
CT: control target
= control target key end

     0   :  { %16 = vsyncpa [#allocation3], 0  ;;  %s3390_s0 = inlined_call_operand.vmem [shape: bf16[8,512], index: 0, kind: input, shape index: {}]   ;;  %s3391_s1 = inlined_call_operand.vmem [shape: bf16[8,1024], index: 1, kind: input, shape index: {}]   ;;  %s3392_s2 = inlined_call_operand.hbm [shape: bf16[512,256], index: 2, kind: input, shape index: {}]   ;;  %s3393_s3 = inlined_call_operand.hbm [shape: f32[1,256], index: 3, kind: input, shape index: {}]   ;;  %s3394_s4 = inlined_call_operand.hbm [shape: bf16[1024,256], index: 4, kind: input, shape index: {}]   ;;  %s3395_s5 = inlined_call_operand.hbm [shape: f32[1,256], index: 5, kind: input, shape index: {}]   ;;  %s3396_s6 = inlined_call_operand.hbm [shape: bf16[256,256], index: 6, kind: input, shape index: {}]   ;;  %s3397_s7 = inlined_call_operand.hbm [shape: bf16[256,256], index: 7, kind: input, shape index: {}]   ;;  %s3398_s8 = inlined_call_operand.hbm [shape: f32[1,256], index: 8, kind: input, shape index: {}]   ;;  %s3399_s9 = inlined_call_operand.hbm [shape: bf16[256,128], index: 9, kind: input, shape index: {}]   ;;  %s3400_s10 = inlined_call_operand.hbm [shape: f32[1,128], index: 10, kind: input, shape index: {}]   ;;  %s3401_s11 = inlined_call_operand.vmem [shape: bf16[8,128], index: 11, kind: output, shape index: {}]  }
   0x1   :  { %17 = vsyncpa [#allocation5], 0 }
   0x2   :  { %18 = vsyncpa [#allocation8], 0 }
   0x3   :  { %19 = vsyncpa [#allocation11], 0 }
   0x4   :  { %20 = vsyncpa [#allocation14], 0  ;;  %s3223_s17 = smov [#allocation4]   ;;  %s3224_s19 = smov [#allocation7]  }
   0x5   :  { %s43_s18 = sshll.u32 %s3223_s17, 4  ;;  %s65_s20 = sshll.u32 %s3224_s19, 4  ;;  %s44_s18 = int_to_ptr.vmem [resolvable:$true] %s43_s18  ;;  %s66_s20 = int_to_ptr.vmem [resolvable:$true] %s65_s20 }
   0x6   :  { %s3041_s21 = scalar_lea.vmem %s44_s18, 32  ;;  %p3046_p1 = scmp.lt.s32.totalorder %s44_s18, %s44_s18 }
   0x7   :  { %p3042_p0 = scmp.ne.s32.totalorder %s44_s18, %s3041_s21  ;;  %p3047_p2 = scmp.lt.s32.totalorder %s3041_s21, %s3041_s21 }
   0x9   :  { %p3048_p3 = por %p3047_p2, %p3046_p1 }
   0xb   :  { %p3049_p4 = pnand %p3048_p3, %p3042_p0 }
   0xd   :  { %3052 = shalt.err (!%p3049_p4)
}
   0xe   :  { %46 = dma.hbm_to_vmem [thread:$0]  %s3393_s3, 32, %s44_s18, [#allocation5]  }
   0xf   :  { %s3061_s24 = scalar_lea.vmem %s66_s20, 32  ;;  %p3066_p6 = scmp.lt.s32.totalorder %s66_s20, %s66_s20 }
  0x10   :  { %p3062_p5 = scmp.ne.s32.totalorder %s66_s20, %s3061_s24  ;;  %p3067_p7 = scmp.lt.s32.totalorder %s3061_s24, %s3061_s24 }
  0x12   :  { %p3068_p8 = por %p3067_p7, %p3066_p6 }
  0x14   :  { %p3069_p9 = pnand %p3068_p8, %p3062_p5 }
  0x16   :  { %3072 = shalt.err (!%p3069_p9)
}
  0x17   :  { %68 = dma.hbm_to_vmem [thread:$0]  %s3395_s5, 32, %s66_s20, [#allocation8]  }
  0x18   :  { %s3225_s27 = smov [#allocation10]   ;;  %s3226_s29 = smov [#allocation13]  }
  0x19   :  { %s86_s28 = sshll.u32 %s3225_s27, 4  ;;  %s108_s30 = sshll.u32 %s3226_s29, 4  ;;  %s87_s28 = int_to_ptr.vmem [resolvable:$true] %s86_s28  ;;  %s109_s30 = int_to_ptr.vmem [resolvable:$true] %s108_s30 }
  0x1a   :  { %s3081_s12 = scalar_lea.vmem %s87_s28, 4096  ;;  %p3086_p11 = scmp.lt.s32.totalorder %s87_s28, %s87_s28 }
  0x1b   :  { %p3082_p10 = scmp.ne.s32.totalorder %s87_s28, %s3081_s12  ;;  %p3087_p12 = scmp.lt.s32.totalorder %s3081_s12, %s3081_s12 }
  0x1d   :  { %p3088_p13 = por %p3087_p12, %p3086_p11 }
  0x1f   :  { %p3089_p0 = pnand %p3088_p13, %p3082_p10 }
  0x21   :  { %3092 = shalt.err (!%p3089_p0)
}
  0x22   :  { %s3227_s3 = smov 128   ;;  %s3228_s13 = smov 8  }
  0x23   :  { %92 = dma.hbm_to_vmem [thread:$0]  %s3397_s7, 4096, %s87_s28, [#allocation11], %s3227_s3, %s3227_s3, %s3228_s13  }
  0x24   :  { %s3101_s15 = scalar_lea.vmem %s109_s30, 2048  ;;  %p3106_p2 = scmp.lt.s32.totalorder %s109_s30, %s109_s30 }
  0x25   :  { %p3102_p1 = scmp.ne.s32.totalorder %s109_s30, %s3101_s15  ;;  %p3107_p3 = scmp.lt.s32.totalorder %s3101_s15, %s3101_s15 }
  0x27   :  { %p3108_p4 = por %p3107_p3, %p3106_p2 }
  0x29   :  { %p3109_p5 = pnand %p3108_p4, %p3102_p1 }
  0x2b   :  { %3112 = shalt.err (!%p3109_p5)
}
  0x2c   :  { %s3229_s16 = smov 64   ;;  %s3230_s17 = smov 4  }
  0x2d   :  { %114 = dma.hbm_to_vmem [thread:$0]  %s3399_s9, 2048, %s109_s30, [#allocation14], %s3229_s16, %s3229_s16, %s3230_s17  }
  0x2e   :  { %s3231_s20 = smov [#allocation2]   ;;  %s3232_s22 = smov [#allocation6]  }
  0x2f   :  { %s30_s21 = sshll.u32 %s3231_s20, 4  ;;  %s52_s23 = sshll.u32 %s3232_s22, 4  ;;  %s31_s21 = int_to_ptr.vmem [resolvable:$true] %s30_s21  ;;  %s53_s23 = int_to_ptr.vmem [resolvable:$true] %s52_s23 }
  0x30   :  { %s3121_s7 = scalar_lea.vmem %s31_s21, 8192  ;;  %p3126_p7 = scmp.lt.s32.totalorder %s31_s21, %s31_s21 }
  0x31   :  { %p3122_p6 = scmp.ne.s32.totalorder %s31_s21, %s3121_s7  ;;  %p3127_p8 = scmp.lt.s32.totalorder %s3121_s7, %s3121_s7 }
  0x33   :  { %p3128_p9 = por %p3127_p8, %p3126_p7 }
  0x35   :  { %p3129_p10 = pnand %p3128_p9, %p3122_p6 }
  0x37   :  { %3132 = shalt.err (!%p3129_p10)
}
  0x38   :  { %36 = dma.hbm_to_vmem [thread:$0]  %s3392_s2, 8192, %s31_s21, [#allocation3], %s3227_s3, %s3227_s3, %s3228_s13  }
  0x39   :  { %s3141_s9 = scalar_lea.vmem %s53_s23, 16384  ;;  %p3146_p12 = scmp.lt.s32.totalorder %s53_s23, %s53_s23 }
  0x3a   :  { %p3142_p11 = scmp.ne.s32.totalorder %s53_s23, %s3141_s9  ;;  %p3147_p13 = scmp.lt.s32.totalorder %s3141_s9, %s3141_s9 }
  0x3c   :  { %p3148_p0 = por %p3147_p13, %p3146_p12 }
  0x3e   :  { %p3149_p1 = pnand %p3148_p0, %p3142_p11 }
  0x40   :  { %3152 = shalt.err (!%p3149_p1)
}
  0x41   :  { %58 = dma.hbm_to_vmem [thread:$0]  %s3394_s4, 16384, %s53_s23, [#allocation5], %s3227_s3, %s3227_s3, %s3228_s13  }
  0x42   :  { %s3233_s28 = smov [#allocation9]   ;;  %s3234_s30 = smov [#allocation12]  }
  0x43   :  { %s74_s29 = sshll.u32 %s3233_s28, 4  ;;  %s99_s12 = sshll.u32 %s3234_s30, 4  ;;  %s75_s29 = int_to_ptr.vmem [resolvable:$true] %s74_s29  ;;  %s100_s12 = int_to_ptr.vmem [resolvable:$true] %s99_s12 }
  0x44   :  { %s3161_s2 = scalar_lea.vmem %s75_s29, 4096  ;;  %p3166_p3 = scmp.lt.s32.totalorder %s75_s29, %s75_s29 }
  0x45   :  { %p3162_p2 = scmp.ne.s32.totalorder %s75_s29, %s3161_s2  ;;  %p3167_p4 = scmp.lt.s32.totalorder %s3161_s2, %s3161_s2 }
  0x47   :  { %p3168_p5 = por %p3167_p4, %p3166_p3 }
  0x49   :  { %p3169_p6 = pnand %p3168_p5, %p3162_p2 }
  0x4b   :  { %3172 = shalt.err (!%p3169_p6)
}
  0x4c   :  { %80 = dma.hbm_to_vmem [thread:$0]  %s3396_s6, 4096, %s75_s29, [#allocation8], %s3227_s3, %s3227_s3, %s3228_s13  }
  0x4d   :  { %s3181_s4 = scalar_lea.vmem %s100_s12, 32  ;;  %p3186_p8 = scmp.lt.s32.totalorder %s100_s12, %s100_s12 }
  0x4e   :  { %p3182_p7 = scmp.ne.s32.totalorder %s100_s12, %s3181_s4  ;;  %p3187_p9 = scmp.lt.s32.totalorder %s3181_s4, %s3181_s4 }
  0x50   :  { %p3188_p10 = por %p3187_p9, %p3186_p8 }
  0x52   :  { %p3189_p11 = pnand %p3188_p10, %p3182_p7 }
  0x54   :  { %3192 = shalt.err (!%p3189_p11)
}
  0x55   :  { %102 = dma.hbm_to_vmem [thread:$0]  %s3398_s8, 32, %s100_s12, [#allocation11]  }
  0x56   :  { %s3235_s17 = smov [#allocation15]  }
  0x57   :  { %s121_s18 = sshll.u32 %s3235_s17, 4  ;;  %s122_s18 = int_to_ptr.vmem [resolvable:$true] %s121_s18 }
  0x58   :  { %s3201_s19 = scalar_lea.vmem %s122_s18, 16  ;;  %s3205_s20 = scalar_lea.vmem %s122_s18, 32 }
  0x59   :  { %p3202_p12 = scmp.ne.s32.totalorder %s122_s18, %s3201_s19  ;;  %p3206_p13 = scmp.lt.s32.totalorder %s122_s18, %s122_s18 }
  0x5a   :  { %p3207_p0 = scmp.lt.s32.totalorder %s3205_s20, %s3201_s19 }
  0x5c   :  { %p3208_p1 = por %p3207_p0, %p3206_p13 }
  0x5e   :  { %p3209_p2 = pnand %p3208_p1, %p3202_p12 }
  0x60   :  { %3212 = shalt.err (!%p3209_p2)
}
  0x61   :  { %124 = dma.hbm_to_vmem [thread:$0]  %s3400_s10, 16, %s122_s18, [#allocation14]  }
  0x62   :  { %3213 = dma.done.wait [#allocation3], 8192  }
  0x63   :  { %3214 = vsyncadd [#allocation3], 4294959104 }
  0x64   :  { %3215 = dma.done.wait [#allocation5], 16416  }
  0x65   :  { %3216 = vsyncadd [#allocation5], 4294950880 }
  0x66   :  { %3217 = dma.done.wait [#allocation8], 4128  }
  0x67   :  { %3218 = vsyncadd [#allocation8], 4294963168 }
  0x68   :  { %3219 = dma.done.wait [#allocation11], 4128  }
  0x69   :  { %3220 = vsyncadd [#allocation11], 4294963168 }
  0x6a   :  { %3221 = dma.done.wait [#allocation14], 2064  }
  0x6b   :  { %3222 = vsyncadd [#allocation14], 4294965232  ;;  %v2621_v0 = vld [vmem:[#allocation2 + $0x74] ss:$8 sps:$4 sm:$0xff]   ;;  %v2625_v2 = vld [vmem:[#allocation2 + $0x70] ss:$8 sps:$4 sm:$0xff]  }
  0x6c   :  { %v2623_v1 = vld [vmem:[#allocation2 + $0x174] ss:$8 sps:$4 sm:$0xff]   ;;  %569 = vmatprep.subr.bf16.mxu0 %v2621_v0  ;;  %v2626_v3 = vld [vmem:[#allocation2 + $0x170] ss:$8 sps:$4 sm:$0xff]   ;;  %v2627_v4 = vld [vmem:[#allocation2 + $0x64] ss:$8 sps:$4 sm:$0xff]  }
  0x6d   :  { %610 = vmatprep.subr.bf16.mxu1 %v2623_v1  ;;  %570 = vmatpush1.bf16.msra.mxu0 %v2625_v2  ;;  %v2629_v5 = vld [vmem:[#allocation2 + $0x164] ss:$8 sps:$4 sm:$0xff]   ;;  %v2631_v6 = vld [vmem:[#allocation2 + $0x60] ss:$8 sps:$4 sm:$0xff]   ;;  %v2633_v8 = vld [vmem:[#allocation2 + $0x54] ss:$8 sps:$4 sm:$0xff]  }
  0x6e   :  { %611 = vmatpush1.bf16.msra.mxu1 %v2626_v3  ;;  %571 = vmatprep.subr.bf16.mxu0 %v2627_v4  ;;  %v2632_v7 = vld [vmem:[#allocation2 + $0x160] ss:$8 sps:$4 sm:$0xff]   ;;  %v2635_v9 = vld [vmem:[#allocation2 + $0x154] ss:$8 sps:$4 sm:$0xff]   ;;  %v2637_v10 = vld [vmem:[#allocation2 + $0x50] ss:$8 sps:$4 sm:$0xff]  }
  0x6f   :  { %612 = vmatprep.subr.bf16.mxu1 %v2629_v5  ;;  %v2638_v11 = vld [vmem:[#allocation2 + $0x150] ss:$8 sps:$4 sm:$0xff]   ;;  %v2639_v12 = vld [vmem:[#allocation2 + $0x44] ss:$8 sps:$4 sm:$0xff]   ;;  %v2643_v14 = vld [vmem:[#allocation2 + $0x40] ss:$8 sps:$4 sm:$0xff]  }
  0x70   :  { %v2641_v13 = vld [vmem:[#allocation2 + $0x144] ss:$8 sps:$4 sm:$0xff]   ;;  %v2644_v15 = vld [vmem:[#allocation2 + $0x140] ss:$8 sps:$4 sm:$0xff]   ;;  %v2645_v16 = vld [vmem:[#allocation2 + $0x34] ss:$8 sps:$4 sm:$0xff]  }
  0x71   :  { %572 = vmatpush1.bf16.msra.mxu0 %v2631_v6  ;;  %v2647_v17 = vld [vmem:[#allocation2 + $0x134] ss:$8 sps:$4 sm:$0xff]   ;;  %v2649_v18 = vld [vmem:[#allocation2 + $0x30] ss:$8 sps:$4 sm:$0xff]   ;;  %v2651_v20 = vld [vmem:[#allocation2 + $0x24] ss:$8 sps:$4 sm:$0xff]  }
  0x72   :  { %613 = vmatpush1.bf16.msra.mxu1 %v2632_v7  ;;  %573 = vmatprep.subr.bf16.mxu0 %v2633_v8  ;;  %v2650_v19 = vld [vmem:[#allocation2 + $0x130] ss:$8 sps:$4 sm:$0xff]   ;;  %v2653_v21 = vld [vmem:[#allocation2 + $0x124] ss:$8 sps:$4 sm:$0xff]   ;;  %v2655_v22 = vld [vmem:[#allocation2 + $0x20] ss:$8 sps:$4 sm:$0xff]  }
  0x73   :  { %614 = vmatprep.subr.bf16.mxu1 %v2635_v9  ;;  %v2656_v23 = vld [vmem:[#allocation2 + $0x120] ss:$8 sps:$4 sm:$0xff]   ;;  %v2657_v24 = vld [vmem:[#allocation2 + $0x14] ss:$8 sps:$4 sm:$0xff]   ;;  %v2661_v26 = vld [vmem:[#allocation2 + $0x10] ss:$8 sps:$4 sm:$0xff]  }
  0x74   :  { %v2659_v25 = vld [vmem:[#allocation2 + $0x114] ss:$8 sps:$4 sm:$0xff]   ;;  %v2662_v27 = vld [vmem:[#allocation2 + $0x110] ss:$8 sps:$4 sm:$0xff]   ;;  %v2663_v28 = vld [vmem:[#allocation2 + $0x4] ss:$8 sps:$4 sm:$0xff]  }
  0x75   :  { %574 = vmatpush1.bf16.msra.mxu0 %v2637_v10  ;;  %v2665_v29 = vld [vmem:[#allocation2 + $0x104] ss:$8 sps:$4 sm:$0xff]   ;;  %v2667_v30 = vld [vmem:[#allocation2] ss:$8 sps:$4 sm:$0xff]   ;;  %v2669_v32 = vld [vmem:[#allocation2 + $0xf4] ss:$8 sps:$4 sm:$0xff]  }
  0x76   :  { %615 = vmatpush1.bf16.msra.mxu1 %v2638_v11  ;;  %575 = vmatprep.subr.bf16.mxu0 %v2639_v12  ;;  %v2668_v31 = vld [vmem:[#allocation2 + $0x100] ss:$8 sps:$4 sm:$0xff]   ;;  %v2671_v33 = vld [vmem:[#allocation2 + $0x1f4] ss:$8 sps:$4 sm:$0xff]   ;;  %v2673_v34 = vld [vmem:[#allocation2 + $0xf0] ss:$8 sps:$4 sm:$0xff]  }
  0x77   :  { %616 = vmatprep.subr.bf16.mxu1 %v2641_v13  ;;  %v2674_v35 = vld [vmem:[#allocation2 + $0x1f0] ss:$8 sps:$4 sm:$0xff]   ;;  %v2675_v36 = vld [vmem:[#allocation2 + $0xe4] ss:$8 sps:$4 sm:$0xff]   ;;  %v2679_v38 = vld [vmem:[#allocation2 + $0xe0] ss:$8 sps:$4 sm:$0xff]  }
  0x78   :  { %v2677_v37 = vld [vmem:[#allocation2 + $0x1e4] ss:$8 sps:$4 sm:$0xff]   ;;  %v2680_v39 = vld [vmem:[#allocation2 + $0x1e0] ss:$8 sps:$4 sm:$0xff]   ;;  %v2681_v40 = vld [vmem:[#allocation2 + $0xd4] ss:$8 sps:$4 sm:$0xff]  }
  0x79   :  { %576 = vmatpush1.bf16.msra.mxu0 %v2643_v14  ;;  %v2683_v41 = vld [vmem:[#allocation2 + $0x1d4] ss:$8 sps:$4 sm:$0xff]   ;;  %v2685_v42 = vld [vmem:[#allocation2 + $0xd0] ss:$8 sps:$4 sm:$0xff]   ;;  %v2687_v44 = vld [vmem:[#allocation2 + $0xc4] ss:$8 sps:$4 sm:$0xff]  }
  0x7a   :  { %617 = vmatpush1.bf16.msra.mxu1 %v2644_v15  ;;  %577 = vmatprep.subr.bf16.mxu0 %v2645_v16  ;;  %v2686_v43 = vld [vmem:[#allocation2 + $0x1d0] ss:$8 sps:$4 sm:$0xff]   ;;  %v2689_v45 = vld [vmem:[#allocation2 + $0x1c4] ss:$8 sps:$4 sm:$0xff]   ;;  %v2691_v49 = vld [vmem:[#allocation2 + $0xc0] ss:$8 sps:$4 sm:$0xff]  }
  0x7b   :  { %618 = vmatprep.subr.bf16.mxu1 %v2647_v17  ;;  %v153_v46 = vld [vmem:[%s3390_s0] sm:$0xff]  ;;  %v154_v48 = vld [vmem:[%s3390_s0 + $0x8] sm:$0xff]  ;;  %v2693_v52 = vld [vmem:[#allocation2 + $0xb4] ss:$8 sps:$4 sm:$0xff]  }
  0x7c   :  { %v2302_v47 = vcombine.high %v153_v46, %v153_v46  ;;  %v2692_v50 = vld [vmem:[#allocation2 + $0x1c0] ss:$8 sps:$4 sm:$0xff]   ;;  %v2304_v51 = vcombine.high %v154_v48, %v154_v48  ;;  %v2695_v53 = vld [vmem:[#allocation2 + $0x1b4] ss:$8 sps:$4 sm:$0xff]   ;;  %v2697_v54 = vld [vmem:[#allocation2 + $0xb0] ss:$8 sps:$4 sm:$0xff]   ;;  %v2301_v6 = vcombine.low %v153_v46, %v153_v46  ;;  %v2303_v7 = vcombine.low %v154_v48, %v154_v48 }
  0x7d   :  { %578 = vmatpush1.bf16.msra.mxu0 %v2649_v18  ;;  %v2698_v55 = vld [vmem:[#allocation2 + $0x1b0] ss:$8 sps:$4 sm:$0xff]   ;;  %v2699_v56 = vld [vmem:[#allocation2 + $0xa4] ss:$8 sps:$4 sm:$0xff]   ;;  %v2703_v58 = vld [vmem:[#allocation2 + $0xa0] ss:$8 sps:$4 sm:$0xff]  }
  0x7e   :  { %619 = vmatpush1.bf16.msra.mxu1 %v2650_v19  ;;  %579 = vmatprep.subr.bf16.mxu0 %v2651_v20  ;;  %v2701_v57 = vld [vmem:[#allocation2 + $0x1a4] ss:$8 sps:$4 sm:$0xff]   ;;  %v2704_v59 = vld [vmem:[#allocation2 + $0x1a0] ss:$8 sps:$4 sm:$0xff]   ;;  %v2705_v60 = vld [vmem:[#allocation2 + $0x94] ss:$8 sps:$4 sm:$0xff]  }
  0x7f   :  { %620 = vmatprep.subr.bf16.mxu1 %v2653_v21  ;;  %601 = vmatprep.mubr.bf16.mxu0 %v2302_v47  ;;  %v2707_v61 = vld [vmem:[#allocation2 + $0x194] ss:$8 sps:$4 sm:$0xff]   ;;  %v2709_v62 = vld [vmem:[#allocation2 + $0x90] ss:$8 sps:$4 sm:$0xff]   ;;  %v2711_v0 = vld [vmem:[#allocation2 + $0x84] ss:$8 sps:$4 sm:$0xff]  }
  0x80   :  { %642 = vmatprep.mubr.bf16.mxu1 %v2304_v51  ;;  %v2710_v63 = vld [vmem:[#allocation2 + $0x190] ss:$8 sps:$4 sm:$0xff]   ;;  %v2713_v1 = vld [vmem:[#allocation2 + $0x184] ss:$8 sps:$4 sm:$0xff]   ;;  %v2715_v2 = vld [vmem:[#allocation2 + $0x80] ss:$8 sps:$4 sm:$0xff]  }
  0x81   :  { %580 = vmatpush1.bf16.msra.mxu0 %v2655_v22  ;;  %v2716_v3 = vld [vmem:[#allocation2 + $0x180] ss:$8 sps:$4 sm:$0xff]   ;;  %v2721_v8 = vld [vmem:[#allocation6 + $0x70] ss:$8 sps:$4 sm:$0xff]  }
  0x82   :  { %621 = vmatpush1.bf16.msra.mxu1 %v2656_v23  ;;  %581 = vmatprep.subr.bf16.mxu0 %v2657_v24  ;;  %v2723_v4 = vld [vmem:[#allocation6 + $0x74] ss:$8 sps:$4 sm:$0xff]   ;;  %v2724_v9 = vld [vmem:[#allocation6 + $0x170] ss:$8 sps:$4 sm:$0xff]   ;;  %v2729_v10 = vld [vmem:[#allocation6 + $0x64] ss:$8 sps:$4 sm:$0xff]  }
  0x83   :  { %622 = vmatprep.subr.bf16.mxu1 %v2659_v25  ;;  %v2726_v5 = vld [vmem:[#allocation6 + $0x174] ss:$8 sps:$4 sm:$0xff]   ;;  %v2732_v11 = vld [vmem:[#allocation6 + $0x164] ss:$8 sps:$4 sm:$0xff]   ;;  %v2727_v12 = vld [vmem:[#allocation6 + $0x60] ss:$8 sps:$4 sm:$0xff]  }
  0x84   :  { %v2730_v13 = vld [vmem:[#allocation6 + $0x160] ss:$8 sps:$4 sm:$0xff]   ;;  %v2735_v14 = vld [vmem:[#allocation6 + $0x54] ss:$8 sps:$4 sm:$0xff]   ;;  %v2733_v16 = vld [vmem:[#allocation6 + $0x50] ss:$8 sps:$4 sm:$0xff]  }
  0x85   :  { %582 = vmatpush1.bf16.msra.mxu0 %v2661_v26  ;;  %v2738_v15 = vld [vmem:[#allocation6 + $0x154] ss:$8 sps:$4 sm:$0xff]   ;;  %v2736_v17 = vld [vmem:[#allocation6 + $0x150] ss:$8 sps:$4 sm:$0xff]   ;;  %v2741_v18 = vld [vmem:[#allocation6 + $0x44] ss:$8 sps:$4 sm:$0xff]  }
  0x86   :  { %623 = vmatpush1.bf16.msra.mxu1 %v2662_v27  ;;  %583 = vmatprep.subr.bf16.mxu0 %v2663_v28  ;;  %v2744_v19 = vld [vmem:[#allocation6 + $0x144] ss:$8 sps:$4 sm:$0xff]   ;;  %v2739_v20 = vld [vmem:[#allocation6 + $0x40] ss:$8 sps:$4 sm:$0xff]   ;;  %v2747_v22 = vld [vmem:[#allocation6 + $0x34] ss:$8 sps:$4 sm:$0xff]  }
  0x87   :  { %624 = vmatprep.subr.bf16.mxu1 %v2665_v29  ;;  %v2742_v21 = vld [vmem:[#allocation6 + $0x140] ss:$8 sps:$4 sm:$0xff]   ;;  %v2750_v23 = vld [vmem:[#allocation6 + $0x134] ss:$8 sps:$4 sm:$0xff]   ;;  %v2745_v24 = vld [vmem:[#allocation6 + $0x30] ss:$8 sps:$4 sm:$0xff]  }
  0x88   :  { %v2748_v25 = vld [vmem:[#allocation6 + $0x130] ss:$8 sps:$4 sm:$0xff]   ;;  %v2753_v26 = vld [vmem:[#allocation6 + $0x24] ss:$8 sps:$4 sm:$0xff]   ;;  %v2751_v28 = vld [vmem:[#allocation6 + $0x20] ss:$8 sps:$4 sm:$0xff]  }
  0x89   :  { %584 = vmatpush1.bf16.msra.mxu0 %v2667_v30  ;;  %v2756_v27 = vld [vmem:[#allocation6 + $0x124] ss:$8 sps:$4 sm:$0xff]   ;;  %v2754_v29 = vld [vmem:[#allocation6 + $0x120] ss:$8 sps:$4 sm:$0xff]   ;;  %v2759_v30 = vld [vmem:[#allocation6 + $0x14] ss:$8 sps:$4 sm:$0xff]  }
  0x8a   :  { %625 = vmatpush1.bf16.msra.mxu1 %v2668_v31  ;;  %585 = vmatprep.subr.bf16.mxu0 %v2669_v32  ;;  %v2762_v31 = vld [vmem:[#allocation6 + $0x114] ss:$8 sps:$4 sm:$0xff]   ;;  %v2777_v46 = vld [vmem:[#allocation6 + $0xe4] ss:$8 sps:$4 sm:$0xff]   ;;  %v2775_v48 = vld [vmem:[#allocation6 + $0xe0] ss:$8 sps:$4 sm:$0xff]  }
  0x8b   :  { %626 = vmatprep.subr.bf16.mxu1 %v2671_v33  ;;  %v3344_v32 = vld [vmem:[%s3391_s1] sm:$0xff]  ;;  %v3349_v33 = vld [vmem:[%s3391_s1 + $0x8] sm:$0xff] }
  0x8c   :  { %v2780_v47 = vld [vmem:[#allocation6 + $0x1e4] ss:$8 sps:$4 sm:$0xff]   ;;  %v2786_v51 = vld [vmem:[#allocation6 + $0x1d4] ss:$8 sps:$4 sm:$0xff]  }
  0x8d   :  { %586 = vmatpush2.bf16.msra.mxu0 %v2673_v34  ;;  %v2757_v34 = vld [vmem:[#allocation6 + $0x10] ss:$8 sps:$4 sm:$0xff]  }
  0x8e   :  { %627 = vmatpush2.bf16.msra.mxu1 %v2674_v35  ;;  %587 = vmatprep.subr.bf16.mxu0 %v2675_v36  ;;  %v2760_v35 = vld [vmem:[#allocation6 + $0x110] ss:$8 sps:$4 sm:$0xff]   ;;  %v2370_v36 = vcombine.high %v3344_v32, %v3344_v32 }
  0x8f   :  { %628 = vmatprep.subr.bf16.mxu1 %v2677_v37  ;;  %v2372_v37 = vcombine.high %v3349_v33, %v3349_v33 }
  0x91   :  { %588 = vmatpush2.bf16.msra.mxu0 %v2679_v38  ;;  %v2765_v38 = vld [vmem:[#allocation6 + $0x4] ss:$8 sps:$4 sm:$0xff]  }
  0x92   :  { %629 = vmatpush2.bf16.msra.mxu1 %v2680_v39  ;;  %589 = vmatprep.subr.bf16.mxu0 %v2681_v40  ;;  %v2768_v39 = vld [vmem:[#allocation6 + $0x104] ss:$8 sps:$4 sm:$0xff]   ;;  %v2763_v40 = vld [vmem:[#allocation6] ss:$8 sps:$4 sm:$0xff]  }
  0x93   :  { %630 = vmatprep.subr.bf16.mxu1 %v2683_v41  ;;  %v2766_v41 = vld [vmem:[#allocation6 + $0x100] ss:$8 sps:$4 sm:$0xff]  }
  0x95   :  { %590 = vmatpush2.bf16.msra.mxu0 %v2685_v42  ;;  %v2771_v42 = vld [vmem:[#allocation6 + $0xf4] ss:$8 sps:$4 sm:$0xff]  }
  0x96   :  { %631 = vmatpush2.bf16.msra.mxu1 %v2686_v43  ;;  %591 = vmatprep.subr.bf16.mxu0 %v2687_v44  ;;  %v2774_v43 = vld [vmem:[#allocation6 + $0x1f4] ss:$8 sps:$4 sm:$0xff]   ;;  %v2769_v44 = vld [vmem:[#allocation6 + $0xf0] ss:$8 sps:$4 sm:$0xff]  }
  0x97   :  { %632 = vmatprep.subr.bf16.mxu1 %v2689_v45  ;;  %v2772_v45 = vld [vmem:[#allocation6 + $0x1f0] ss:$8 sps:$4 sm:$0xff]  }
  0x99   :  { %592 = vmatpush2.bf16.msra.mxu0 %v2691_v49  ;;  %v2778_v49 = vld [vmem:[#allocation6 + $0x1e0] ss:$8 sps:$4 sm:$0xff]  }
  0x9a   :  { %633 = vmatpush2.bf16.msra.mxu1 %v2692_v50  ;;  %593 = vmatprep.subr.bf16.mxu0 %v2693_v52  ;;  %v2783_v50 = vld [vmem:[#allocation6 + $0xd4] ss:$8 sps:$4 sm:$0xff]   ;;  %v2781_v52 = vld [vmem:[#allocation6 + $0xd0] ss:$8 sps:$4 sm:$0xff]  }
  0x9b   :  { %634 = vmatprep.subr.bf16.mxu1 %v2695_v53  ;;  %v2784_v53 = vld [vmem:[#allocation6 + $0x1d0] ss:$8 sps:$4 sm:$0xff]  }
  0x9d   :  { %594 = vmatpush2.bf16.msra.mxu0 %v2697_v54  ;;  %v2789_v54 = vld [vmem:[#allocation6 + $0xc4] ss:$8 sps:$4 sm:$0xff]  }
  0x9e   :  { %635 = vmatpush2.bf16.msra.mxu1 %v2698_v55  ;;  %595 = vmatprep.subr.bf16.mxu0 %v2699_v56  ;;  %v2792_v55 = vld [vmem:[#allocation6 + $0x1c4] ss:$8 sps:$4 sm:$0xff]   ;;  %v2787_v56 = vld [vmem:[#allocation6 + $0xc0] ss:$8 sps:$4 sm:$0xff]  }
  0x9f   :  { %636 = vmatprep.subr.bf16.mxu1 %v2701_v57  ;;  %v2790_v57 = vld [vmem:[#allocation6 + $0x1c0] ss:$8 sps:$4 sm:$0xff]  }
  0xa1   :  { %596 = vmatpush2.bf16.msra.mxu0 %v2703_v58  ;;  %v2795_v58 = vld [vmem:[#allocation6 + $0xb4] ss:$8 sps:$4 sm:$0xff]  }
  0xa2   :  { %637 = vmatpush2.bf16.msra.mxu1 %v2704_v59  ;;  %597 = vmatprep.subr.bf16.mxu0 %v2705_v60  ;;  %v2798_v59 = vld [vmem:[#allocation6 + $0x1b4] ss:$8 sps:$4 sm:$0xff]   ;;  %v2793_v60 = vld [vmem:[#allocation6 + $0xb0] ss:$8 sps:$4 sm:$0xff]  }
  0xa3   :  { %638 = vmatprep.subr.bf16.mxu1 %v2707_v61  ;;  %v2796_v61 = vld [vmem:[#allocation6 + $0x1b0] ss:$8 sps:$4 sm:$0xff]  }
  0xa5   :  { %598 = vmatpush2.bf16.msra.mxu0 %v2709_v62  ;;  %v2801_v62 = vld [vmem:[#allocation6 + $0xa4] ss:$8 sps:$4 sm:$0xff]  }
  0xa6   :  { %639 = vmatpush2.bf16.msra.mxu1 %v2710_v63  ;;  %599 = vmatprep.subr.bf16.mxu0 %v2711_v0  ;;  %v2804_v63 = vld [vmem:[#allocation6 + $0x1a4] ss:$8 sps:$4 sm:$0xff]   ;;  %v2799_v0 = vld [vmem:[#allocation6 + $0xa0] ss:$8 sps:$4 sm:$0xff]  }
  0xa7   :  { %640 = vmatprep.subr.bf16.mxu1 %v2713_v1  ;;  %v2802_v1 = vld [vmem:[#allocation6 + $0x1a0] ss:$8 sps:$4 sm:$0xff]  }
  0xa9   :  { %600 = vmatpush2.bf16.msra.mxu0 %v2715_v2  ;;  %v2807_v2 = vld [vmem:[#allocation6 + $0x94] ss:$8 sps:$4 sm:$0xff]  }
  0xaa   :  { %641 = vmatpush2.bf16.msra.mxu1 %v2716_v3  ;;  %1461 = vmatprep.subr.bf16.mxu0 %v2723_v4  ;;  %v2810_v3 = vld [vmem:[#allocation6 + $0x194] ss:$8 sps:$4 sm:$0xff]   ;;  %v2805_v4 = vld [vmem:[#allocation6 + $0x90] ss:$8 sps:$4 sm:$0xff]  }
  0xab   :  { %1502 = vmatprep.subr.bf16.mxu1 %v2726_v5  ;;  %v2808_v5 = vld [vmem:[#allocation6 + $0x190] ss:$8 sps:$4 sm:$0xff]  }
  0xac   :  { %602 = vmatmul.mubr.bf16.vlgmr.msra.gmra.mxu0 %v2301_v6  ;;  %v2813_v6 = vld [vmem:[#allocation6 + $0x84] ss:$8 sps:$4 sm:$0xff]  }
  0xad   :  { %643 = vmatmul.mubr.bf16.vlgmr.msra.gmra.mxu1 %v2303_v7  ;;  %1462 = vmatpush1.bf16.msra.mxu0 %v2721_v8  ;;  %v2816_v7 = vld [vmem:[#allocation6 + $0x184] ss:$8 sps:$4 sm:$0xff]   ;;  %v2811_v8 = vld [vmem:[#allocation6 + $0x80] ss:$8 sps:$4 sm:$0xff]  }
  0xae   :  { %1503 = vmatpush1.bf16.msra.mxu1 %v2724_v9  ;;  %1463 = vmatprep.subr.bf16.mxu0 %v2729_v10  ;;  %v2814_v9 = vld [vmem:[#allocation6 + $0x180] ss:$8 sps:$4 sm:$0xff]   ;;  %v2823_v10 = vld [vmem:[#allocation6 + $0x274] ss:$8 sps:$4 sm:$0xff]  }
  0xaf   :  { %1504 = vmatprep.subr.bf16.mxu1 %v2732_v11  ;;  %1493 = vmatprep.mubr.bf16.mxu0 %v2370_v36  ;;  %v2826_v11 = vld [vmem:[#allocation6 + $0x374] ss:$8 sps:$4 sm:$0xff]   ;;  %v2853_v36 = vld [vmem:[#allocation6 + $0x224] ss:$8 sps:$4 sm:$0xff]  }
  0xb0   :  { %1534 = vmatprep.mubr.bf16.mxu1 %v2372_v37  ;;  %v2856_v37 = vld [vmem:[#allocation6 + $0x324] ss:$8 sps:$4 sm:$0xff]  }
  0xb1   :  { %1464 = vmatpush1.bf16.msra.mxu0 %v2727_v12  ;;  %v2369_v12 = vcombine.low %v3344_v32, %v3344_v32  ;;  %v2847_v32 = vld [vmem:[#allocation6 + $0x234] ss:$8 sps:$4 sm:$0xff]  }
  0xb2   :  { %1505 = vmatpush1.bf16.msra.mxu1 %v2730_v13  ;;  %1465 = vmatprep.subr.bf16.mxu0 %v2735_v14  ;;  %v2371_v13 = vcombine.low %v3349_v33, %v3349_v33  ;;  %v2821_v14 = vld [vmem:[#allocation6 + $0x270] ss:$8 sps:$4 sm:$0xff]   ;;  %v2850_v33 = vld [vmem:[#allocation6 + $0x334] ss:$8 sps:$4 sm:$0xff]  }
  0xb3   :  { %1506 = vmatprep.subr.bf16.mxu1 %v2738_v15  ;;  %v2824_v15 = vld [vmem:[#allocation6 + $0x370] ss:$8 sps:$4 sm:$0xff]  }
  0xb5   :  { %1466 = vmatpush1.bf16.msra.mxu0 %v2733_v16  ;;  %v2829_v16 = vld [vmem:[#allocation6 + $0x264] ss:$8 sps:$4 sm:$0xff]  }
  0xb6   :  { %1507 = vmatpush1.bf16.msra.mxu1 %v2736_v17  ;;  %1467 = vmatprep.subr.bf16.mxu0 %v2741_v18  ;;  %v2832_v17 = vld [vmem:[#allocation6 + $0x364] ss:$8 sps:$4 sm:$0xff]  }
  0xb7   :  { %1508 = vmatprep.subr.bf16.mxu1 %v2744_v19  ;;  %v3362_v18 = vld [vmem:[%s3391_s1 + $0x10] sm:$0xff]  ;;  %v3367_v19 = vld [vmem:[%s3391_s1 + $0x18] sm:$0xff] }
  0xb9   :  { %1468 = vmatpush1.bf16.msra.mxu0 %v2739_v20  ;;  %v2374_v20 = vcombine.high %v3362_v18, %v3362_v18 }
  0xba   :  { %1509 = vmatpush1.bf16.msra.mxu1 %v2742_v21  ;;  %1469 = vmatprep.subr.bf16.mxu0 %v2747_v22  ;;  %v2376_v21 = vcombine.high %v3367_v19, %v3367_v19  ;;  %v2827_v22 = vld [vmem:[#allocation6 + $0x260] ss:$8 sps:$4 sm:$0xff]  }
  0xbb   :  { %1510 = vmatprep.subr.bf16.mxu1 %v2750_v23  ;;  %v2830_v23 = vld [vmem:[#allocation6 + $0x360] ss:$8 sps:$4 sm:$0xff]  }
  0xbd   :  { %1470 = vmatpush1.bf16.msra.mxu0 %v2745_v24  ;;  %v2835_v24 = vld [vmem:[#allocation6 + $0x254] ss:$8 sps:$4 sm:$0xff]  }
  0xbe   :  { %1511 = vmatpush1.bf16.msra.mxu1 %v2748_v25  ;;  %1471 = vmatprep.subr.bf16.mxu0 %v2753_v26  ;;  %v2838_v25 = vld [vmem:[#allocation6 + $0x354] ss:$8 sps:$4 sm:$0xff]   ;;  %v2833_v26 = vld [vmem:[#allocation6 + $0x250] ss:$8 sps:$4 sm:$0xff]  }
  0xbf   :  { %1512 = vmatprep.subr.bf16.mxu1 %v2756_v27  ;;  %v2836_v27 = vld [vmem:[#allocation6 + $0x350] ss:$8 sps:$4 sm:$0xff]  }
  0xc1   :  { %1472 = vmatpush1.bf16.msra.mxu0 %v2751_v28  ;;  %v2841_v28 = vld [vmem:[#allocation6 + $0x244] ss:$8 sps:$4 sm:$0xff]  }
  0xc2   :  { %1513 = vmatpush1.bf16.msra.mxu1 %v2754_v29  ;;  %1473 = vmatprep.subr.bf16.mxu0 %v2759_v30  ;;  %v2844_v29 = vld [vmem:[#allocation6 + $0x344] ss:$8 sps:$4 sm:$0xff]   ;;  %v2839_v30 = vld [vmem:[#allocation6 + $0x240] ss:$8 sps:$4 sm:$0xff]  }
  0xc3   :  { %1514 = vmatprep.subr.bf16.mxu1 %v2762_v31  ;;  %v2842_v31 = vld [vmem:[#allocation6 + $0x340] ss:$8 sps:$4 sm:$0xff]  }
  0xc5   :  { %1474 = vmatpush1.bf16.msra.mxu0 %v2757_v34  ;;  %v2845_v34 = vld [vmem:[#allocation6 + $0x230] ss:$8 sps:$4 sm:$0xff]  }
  0xc6   :  { %1515 = vmatpush1.bf16.msra.mxu1 %v2760_v35  ;;  %1475 = vmatprep.subr.bf16.mxu0 %v2765_v38  ;;  %v2848_v35 = vld [vmem:[#allocation6 + $0x330] ss:$8 sps:$4 sm:$0xff]   ;;  %v2851_v38 = vld [vmem:[#allocation6 + $0x220] ss:$8 sps:$4 sm:$0xff]  }
  0xc7   :  { %1516 = vmatprep.subr.bf16.mxu1 %v2768_v39  ;;  %v2854_v39 = vld [vmem:[#allocation6 + $0x320] ss:$8 sps:$4 sm:$0xff]  }
  0xc9   :  { %1476 = vmatpush1.bf16.msra.mxu0 %v2763_v40  ;;  %v2859_v40 = vld [vmem:[#allocation6 + $0x214] ss:$8 sps:$4 sm:$0xff]  }
  0xca   :  { %1517 = vmatpush1.bf16.msra.mxu1 %v2766_v41  ;;  %1477 = vmatprep.subr.bf16.mxu0 %v2771_v42  ;;  %v2862_v41 = vld [vmem:[#allocation6 + $0x314] ss:$8 sps:$4 sm:$0xff]   ;;  %v2857_v42 = vld [vmem:[#allocation6 + $0x210] ss:$8 sps:$4 sm:$0xff]  }
  0xcb   :  { %1518 = vmatprep.subr.bf16.mxu1 %v2774_v43  ;;  %v2860_v43 = vld [vmem:[#allocation6 + $0x310] ss:$8 sps:$4 sm:$0xff]  }
  0xcd   :  { %1478 = vmatpush2.bf16.msra.mxu0 %v2769_v44  ;;  %v2865_v44 = vld [vmem:[#allocation6 + $0x204] ss:$8 sps:$4 sm:$0xff]  }
  0xce   :  { %1519 = vmatpush2.bf16.msra.mxu1 %v2772_v45  ;;  %1479 = vmatprep.subr.bf16.mxu0 %v2777_v46  ;;  %v2868_v45 = vld [vmem:[#allocation6 + $0x304] ss:$8 sps:$4 sm:$0xff]   ;;  %v2863_v46 = vld [vmem:[#allocation6 + $0x200] ss:$8 sps:$4 sm:$0xff]  }
  0xcf   :  { %1520 = vmatprep.subr.bf16.mxu1 %v2780_v47  ;;  %v2866_v47 = vld [vmem:[#allocation6 + $0x300] ss:$8 sps:$4 sm:$0xff]  }
  0xd1   :  { %1480 = vmatpush2.bf16.msra.mxu0 %v2775_v48  ;;  %v2871_v48 = vld [vmem:[#allocation6 + $0x2f4] ss:$8 sps:$4 sm:$0xff]  }
  0xd2   :  { %1521 = vmatpush2.bf16.msra.mxu1 %v2778_v49  ;;  %1481 = vmatprep.subr.bf16.mxu0 %v2783_v50  ;;  %v2874_v49 = vld [vmem:[#allocation6 + $0x3f4] ss:$8 sps:$4 sm:$0xff]   ;;  %v2869_v50 = vld [vmem:[#allocation6 + $0x2f0] ss:$8 sps:$4 sm:$0xff]  }
  0xd3   :  { %1522 = vmatprep.subr.bf16.mxu1 %v2786_v51  ;;  %v2872_v51 = vld [vmem:[#allocation6 + $0x3f0] ss:$8 sps:$4 sm:$0xff]  }
  0xd5   :  { %1482 = vmatpush2.bf16.msra.mxu0 %v2781_v52  ;;  %v2877_v52 = vld [vmem:[#allocation6 + $0x2e4] ss:$8 sps:$4 sm:$0xff]  }
  0xd6   :  { %1523 = vmatpush2.bf16.msra.mxu1 %v2784_v53  ;;  %1483 = vmatprep.subr.bf16.mxu0 %v2789_v54  ;;  %v2880_v53 = vld [vmem:[#allocation6 + $0x3e4] ss:$8 sps:$4 sm:$0xff]   ;;  %v2875_v54 = vld [vmem:[#allocation6 + $0x2e0] ss:$8 sps:$4 sm:$0xff]  }
  0xd7   :  { %1524 = vmatprep.subr.bf16.mxu1 %v2792_v55  ;;  %v2878_v55 = vld [vmem:[#allocation6 + $0x3e0] ss:$8 sps:$4 sm:$0xff]  }
  0xd9   :  { %1484 = vmatpush2.bf16.msra.mxu0 %v2787_v56  ;;  %v2883_v56 = vld [vmem:[#allocation6 + $0x2d4] ss:$8 sps:$4 sm:$0xff]  }
  0xda   :  { %1525 = vmatpush2.bf16.msra.mxu1 %v2790_v57  ;;  %1485 = vmatprep.subr.bf16.mxu0 %v2795_v58  ;;  %v2886_v57 = vld [vmem:[#allocation6 + $0x3d4] ss:$8 sps:$4 sm:$0xff]   ;;  %v2881_v58 = vld [vmem:[#allocation6 + $0x2d0] ss:$8 sps:$4 sm:$0xff]  }
  0xdb   :  { %1526 = vmatprep.subr.bf16.mxu1 %v2798_v59  ;;  %v2884_v59 = vld [vmem:[#allocation6 + $0x3d0] ss:$8 sps:$4 sm:$0xff]  }
  0xdd   :  { %1486 = vmatpush2.bf16.msra.mxu0 %v2793_v60  ;;  %v2889_v60 = vld [vmem:[#allocation6 + $0x2c4] ss:$8 sps:$4 sm:$0xff]  }
  0xde   :  { %1527 = vmatpush2.bf16.msra.mxu1 %v2796_v61  ;;  %1487 = vmatprep.subr.bf16.mxu0 %v2801_v62  ;;  %v2892_v61 = vld [vmem:[#allocation6 + $0x3c4] ss:$8 sps:$4 sm:$0xff]   ;;  %v2887_v62 = vld [vmem:[#allocation6 + $0x2c0] ss:$8 sps:$4 sm:$0xff]  }
  0xdf   :  { %1528 = vmatprep.subr.bf16.mxu1 %v2804_v63  ;;  %v2890_v63 = vld [vmem:[#allocation6 + $0x3c0] ss:$8 sps:$4 sm:$0xff]  }
  0xe1   :  { %1488 = vmatpush2.bf16.msra.mxu0 %v2799_v0  ;;  %v2895_v0 = vld [vmem:[#allocation6 + $0x2b4] ss:$8 sps:$4 sm:$0xff]  }
  0xe2   :  { %1529 = vmatpush2.bf16.msra.mxu1 %v2802_v1  ;;  %1489 = vmatprep.subr.bf16.mxu0 %v2807_v2  ;;  %v2898_v1 = vld [vmem:[#allocation6 + $0x3b4] ss:$8 sps:$4 sm:$0xff]   ;;  %v2893_v2 = vld [vmem:[#allocation6 + $0x2b0] ss:$8 sps:$4 sm:$0xff]  }
  0xe3   :  { %1530 = vmatprep.subr.bf16.mxu1 %v2810_v3  ;;  %v2896_v3 = vld [vmem:[#allocation6 + $0x3b0] ss:$8 sps:$4 sm:$0xff]  }
  0xe5   :  { %1490 = vmatpush2.bf16.msra.mxu0 %v2805_v4  ;;  %v2901_v4 = vld [vmem:[#allocation6 + $0x2a4] ss:$8 sps:$4 sm:$0xff]  }
  0xe6   :  { %1531 = vmatpush2.bf16.msra.mxu1 %v2808_v5  ;;  %1491 = vmatprep.subr.bf16.mxu0 %v2813_v6  ;;  %v2904_v5 = vld [vmem:[#allocation6 + $0x3a4] ss:$8 sps:$4 sm:$0xff]   ;;  %v2899_v6 = vld [vmem:[#allocation6 + $0x2a0] ss:$8 sps:$4 sm:$0xff]  }
  0xe7   :  { %1532 = vmatprep.subr.bf16.mxu1 %v2816_v7  ;;  %v2902_v7 = vld [vmem:[#allocation6 + $0x3a0] ss:$8 sps:$4 sm:$0xff]  }
  0xe9   :  { %1492 = vmatpush2.bf16.msra.mxu0 %v2811_v8  ;;  %v2907_v8 = vld [vmem:[#allocation6 + $0x294] ss:$8 sps:$4 sm:$0xff]  }
  0xea   :  { %1533 = vmatpush2.bf16.msra.mxu1 %v2814_v9  ;;  %1543 = vmatprep.subr.bf16.mxu0 %v2823_v10  ;;  %v2910_v9 = vld [vmem:[#allocation6 + $0x394] ss:$8 sps:$4 sm:$0xff]   ;;  %v2905_v10 = vld [vmem:[#allocation6 + $0x290] ss:$8 sps:$4 sm:$0xff]  }
  0xeb   :  { %1584 = vmatprep.subr.bf16.mxu1 %v2826_v11  ;;  %v2908_v11 = vld [vmem:[#allocation6 + $0x390] ss:$8 sps:$4 sm:$0xff]  }
  0xec   :  { %1494 = vmatmul.mubr.bf16.vlgmr.msra.gmra.mxu0 %v2369_v12  ;;  %v2913_v12 = vld [vmem:[#allocation6 + $0x284] ss:$8 sps:$4 sm:$0xff]  }
  0xed   :  { %1535 = vmatmul.mubr.bf16.vlgmr.msra.gmra.mxu1 %v2371_v13  ;;  %1544 = vmatpush1.bf16.msra.mxu0 %v2821_v14  ;;  %v2916_v13 = vld [vmem:[#allocation6 + $0x384] ss:$8 sps:$4 sm:$0xff]   ;;  %v2911_v14 = vld [vmem:[#allocation6 + $0x280] ss:$8 sps:$4 sm:$0xff]  }
  0xee   :  { %1585 = vmatpush1.bf16.msra.mxu1 %v2824_v15  ;;  %1545 = vmatprep.subr.bf16.mxu0 %v2829_v16  ;;  %v2914_v15 = vld [vmem:[#allocation6 + $0x380] ss:$8 sps:$4 sm:$0xff]  }
  0xef   :  { %1586 = vmatprep.subr.bf16.mxu1 %v2832_v17  ;;  %1575 = vmatprep.mubr.bf16.mxu0 %v2374_v20  ;;  %v2923_v16 = vld [vmem:[#allocation9 + $0x74] ss:$8 sps:$4 sm:$0xff]   ;;  %v2373_v17 = vcombine.low %v3362_v18, %v3362_v18  ;;  %v2375_v20 = vcombine.low %v3367_v19, %v3367_v19  ;;  %v2930_v19 = vld [vmem:[#allocation9 + $0x40] ss:$8 sps:$4 sm:$0xff]  }
  0xf0   :  { %1616 = vmatprep.mubr.bf16.mxu1 %v2376_v21  ;;  %v2921_v21 = vld [vmem:[#allocation9 + $0x70] ss:$8 sps:$4 sm:$0xff]   ;;  %v2971_v18 = vld [vmem:[#allocation10 + $0x74] ss:$8 sps:$4 sm:$0xff]  }
  0xf1   :  { %1546 = vmatpush1.bf16.msra.mxu0 %v2827_v22  ;;  %v2926_v22 = vld [vmem:[#allocation9 + $0x64] ss:$8 sps:$4 sm:$0xff]  }
  0xf2   :  { %1587 = vmatpush1.bf16.msra.mxu1 %v2830_v23  ;;  %1547 = vmatprep.subr.bf16.mxu0 %v2835_v24  ;;  %v2924_v23 = vld [vmem:[#allocation9 + $0x60] ss:$8 sps:$4 sm:$0xff]   ;;  %v2929_v24 = vld [vmem:[#allocation9 + $0x54] ss:$8 sps:$4 sm:$0xff]  }
  0xf3   :  { %1588 = vmatprep.subr.bf16.mxu1 %v2838_v25  ;;  %v2927_v25 = vld [vmem:[#allocation9 + $0x50] ss:$8 sps:$4 sm:$0xff]  }
  0xf5   :  { %1548 = vmatpush1.bf16.msra.mxu0 %v2833_v26  ;;  %v2932_v26 = vld [vmem:[#allocation9 + $0x44] ss:$8 sps:$4 sm:$0xff]  }
  0xf6   :  { %1589 = vmatpush1.bf16.msra.mxu1 %v2836_v27  ;;  %1549 = vmatprep.subr.bf16.mxu0 %v2841_v28  ;;  %v2969_v27 = vld [vmem:[#allocation10 + $0x70] ss:$8 sps:$4 sm:$0xff]   ;;  %v2974_v28 = vld [vmem:[#allocation10 + $0x64] ss:$8 sps:$4 sm:$0xff]  }
  0xf7   :  { %1590 = vmatprep.subr.bf16.mxu1 %v2844_v29  ;;  %v2972_v29 = vld [vmem:[#allocation10 + $0x60] ss:$8 sps:$4 sm:$0xff]  }
  0xf9   :  { %1550 = vmatpush1.bf16.msra.mxu0 %v2839_v30  ;;  %v2935_v30 = vld [vmem:[#allocation9 + $0x34] ss:$8 sps:$4 sm:$0xff]  }
  0xfa   :  { %1591 = vmatpush1.bf16.msra.mxu1 %v2842_v31  ;;  %1551 = vmatprep.subr.bf16.mxu0 %v2847_v32  ;;  %v2977_v31 = vld [vmem:[#allocation10 + $0x54] ss:$8 sps:$4 sm:$0xff]   ;;  %v2933_v32 = vld [vmem:[#allocation9 + $0x30] ss:$8 sps:$4 sm:$0xff]  }
  0xfb   :  { %1592 = vmatprep.subr.bf16.mxu1 %v2850_v33  ;;  %v2975_v33 = vld [vmem:[#allocation10 + $0x50] ss:$8 sps:$4 sm:$0xff]  }
  0xfd   :  { %1552 = vmatpush1.bf16.msra.mxu0 %v2845_v34  ;;  %v2938_v34 = vld [vmem:[#allocation9 + $0x24] ss:$8 sps:$4 sm:$0xff]  }
  0xfe   :  { %1593 = vmatpush1.bf16.msra.mxu1 %v2848_v35  ;;  %1553 = vmatprep.subr.bf16.mxu0 %v2853_v36  ;;  %v2980_v35 = vld [vmem:[#allocation10 + $0x44] ss:$8 sps:$4 sm:$0xff]   ;;  %v2936_v36 = vld [vmem:[#allocation9 + $0x20] ss:$8 sps:$4 sm:$0xff]  }
  0xff   :  { %1594 = vmatprep.subr.bf16.mxu1 %v2856_v37  ;;  %v2978_v37 = vld [vmem:[#allocation10 + $0x40] ss:$8 sps:$4 sm:$0xff]  }
 0x101   :  { %1554 = vmatpush1.bf16.msra.mxu0 %v2851_v38  ;;  %v2941_v38 = vld [vmem:[#allocation9 + $0x14] ss:$8 sps:$4 sm:$0xff]  }
 0x102   :  { %1595 = vmatpush1.bf16.msra.mxu1 %v2854_v39  ;;  %1555 = vmatprep.subr.bf16.mxu0 %v2859_v40  ;;  %v2983_v39 = vld [vmem:[#allocation10 + $0x34] ss:$8 sps:$4 sm:$0xff]   ;;  %v2939_v40 = vld [vmem:[#allocation9 + $0x10] ss:$8 sps:$4 sm:$0xff]  }
 0x103   :  { %1596 = vmatprep.subr.bf16.mxu1 %v2862_v41  ;;  %v2981_v41 = vld [vmem:[#allocation10 + $0x30] ss:$8 sps:$4 sm:$0xff]  }
 0x105   :  { %1556 = vmatpush1.bf16.msra.mxu0 %v2857_v42  ;;  %v2944_v42 = vld [vmem:[#allocation9 + $0x4] ss:$8 sps:$4 sm:$0xff]  }
 0x106   :  { %1597 = vmatpush1.bf16.msra.mxu1 %v2860_v43  ;;  %1557 = vmatprep.subr.bf16.mxu0 %v2865_v44  ;;  %v2986_v43 = vld [vmem:[#allocation10 + $0x24] ss:$8 sps:$4 sm:$0xff]   ;;  %v2942_v44 = vld [vmem:[#allocation9] ss:$8 sps:$4 sm:$0xff]  }
 0x107   :  { %1598 = vmatprep.subr.bf16.mxu1 %v2868_v45  ;;  %v2984_v45 = vld [vmem:[#allocation10 + $0x20] ss:$8 sps:$4 sm:$0xff]  }
 0x109   :  { %1558 = vmatpush1.bf16.msra.mxu0 %v2863_v46  ;;  %v2947_v46 = vld [vmem:[#allocation9 + $0xf4] ss:$8 sps:$4 sm:$0xff]  }
 0x10a   :  { %1599 = vmatpush1.bf16.msra.mxu1 %v2866_v47  ;;  %1559 = vmatprep.subr.bf16.mxu0 %v2871_v48  ;;  %v2989_v47 = vld [vmem:[#allocation10 + $0x14] ss:$8 sps:$4 sm:$0xff]   ;;  %v2945_v48 = vld [vmem:[#allocation9 + $0xf0] ss:$8 sps:$4 sm:$0xff]  }
 0x10b   :  { %1600 = vmatprep.subr.bf16.mxu1 %v2874_v49  ;;  %v2987_v49 = vld [vmem:[#allocation10 + $0x10] ss:$8 sps:$4 sm:$0xff]  }
 0x10d   :  { %1560 = vmatpush2.bf16.msra.mxu0 %v2869_v50  ;;  %v2950_v50 = vld [vmem:[#allocation9 + $0xe4] ss:$8 sps:$4 sm:$0xff]  }
 0x10e   :  { %1601 = vmatpush2.bf16.msra.mxu1 %v2872_v51  ;;  %1561 = vmatprep.subr.bf16.mxu0 %v2877_v52  ;;  %v2992_v51 = vld [vmem:[#allocation10 + $0x4] ss:$8 sps:$4 sm:$0xff]   ;;  %v2948_v52 = vld [vmem:[#allocation9 + $0xe0] ss:$8 sps:$4 sm:$0xff]  }
 0x10f   :  { %1602 = vmatprep.subr.bf16.mxu1 %v2880_v53  ;;  %v2990_v53 = vld [vmem:[#allocation10] ss:$8 sps:$4 sm:$0xff]  }
 0x111   :  { %1562 = vmatpush2.bf16.msra.mxu0 %v2875_v54  ;;  %v2953_v54 = vld [vmem:[#allocation9 + $0xd4] ss:$8 sps:$4 sm:$0xff]  }
 0x112   :  { %1603 = vmatpush2.bf16.msra.mxu1 %v2878_v55  ;;  %1563 = vmatprep.subr.bf16.mxu0 %v2883_v56  ;;  %v2995_v55 = vld [vmem:[#allocation10 + $0xf4] ss:$8 sps:$4 sm:$0xff]   ;;  %v2951_v56 = vld [vmem:[#allocation9 + $0xd0] ss:$8 sps:$4 sm:$0xff]  }
 0x113   :  { %1604 = vmatprep.subr.bf16.mxu1 %v2886_v57  ;;  %v2993_v57 = vld [vmem:[#allocation10 + $0xf0] ss:$8 sps:$4 sm:$0xff]  }
 0x115   :  { %1564 = vmatpush2.bf16.msra.mxu0 %v2881_v58  ;;  %v2956_v58 = vld [vmem:[#allocation9 + $0xc4] ss:$8 sps:$4 sm:$0xff]  }
 0x116   :  { %1605 = vmatpush2.bf16.msra.mxu1 %v2884_v59  ;;  %1565 = vmatprep.subr.bf16.mxu0 %v2889_v60  ;;  %v2998_v59 = vld [vmem:[#allocation10 + $0xe4] ss:$8 sps:$4 sm:$0xff]   ;;  %v2954_v60 = vld [vmem:[#allocation9 + $0xc0] ss:$8 sps:$4 sm:$0xff]  }
 0x117   :  { %1606 = vmatprep.subr.bf16.mxu1 %v2892_v61  ;;  %v2996_v61 = vld [vmem:[#allocation10 + $0xe0] ss:$8 sps:$4 sm:$0xff]  }
 0x119   :  { %1566 = vmatpush2.bf16.msra.mxu0 %v2887_v62  ;;  %v2959_v62 = vld [vmem:[#allocation9 + $0xb4] ss:$8 sps:$4 sm:$0xff]  }
 0x11a   :  { %1607 = vmatpush2.bf16.msra.mxu1 %v2890_v63  ;;  %1567 = vmatprep.subr.bf16.mxu0 %v2895_v0  ;;  %v3001_v63 = vld [vmem:[#allocation10 + $0xd4] ss:$8 sps:$4 sm:$0xff]   ;;  %v2957_v0 = vld [vmem:[#allocation9 + $0xb0] ss:$8 sps:$4 sm:$0xff]  }
 0x11b   :  { %1608 = vmatprep.subr.bf16.mxu1 %v2898_v1  ;;  %v2999_v1 = vld [vmem:[#allocation10 + $0xd0] ss:$8 sps:$4 sm:$0xff]  }
 0x11d   :  { %1568 = vmatpush2.bf16.msra.mxu0 %v2893_v2  ;;  %v2962_v2 = vld [vmem:[#allocation9 + $0xa4] ss:$8 sps:$4 sm:$0xff]  }
 0x11e   :  { %1609 = vmatpush2.bf16.msra.mxu1 %v2896_v3  ;;  %1569 = vmatprep.subr.bf16.mxu0 %v2901_v4  ;;  %v3004_v3 = vld [vmem:[#allocation10 + $0xc4] ss:$8 sps:$4 sm:$0xff]   ;;  %v225_v4 = vlaneseq }
 0x11f   :  { %1610 = vmatprep.subr.bf16.mxu1 %v2904_v5  ;;  %v2960_v5 = vld [vmem:[#allocation9 + $0xa0] ss:$8 sps:$4 sm:$0xff]  }
 0x121   :  { %1570 = vmatpush2.bf16.msra.mxu0 %v2899_v6  ;;  %v3002_v6 = vld [vmem:[#allocation10 + $0xc0] ss:$8 sps:$4 sm:$0xff]  }
 0x122   :  { %1611 = vmatpush2.bf16.msra.mxu1 %v2902_v7  ;;  %1571 = vmatprep.subr.bf16.mxu0 %v2907_v8  ;;  %v2965_v7 = vld [vmem:[#allocation9 + $0x94] ss:$8 sps:$4 sm:$0xff]  }
 0x123   :  { %1612 = vmatprep.subr.bf16.mxu1 %v2910_v9  ;;  %v3007_v8 = vld [vmem:[#allocation10 + $0xb4] ss:$8 sps:$4 sm:$0xff]   ;;  %v226_v9 = vshrl.u32 %v225_v4, 7 }
 0x125   :  { %1572 = vmatpush2.bf16.msra.mxu0 %v2905_v10  ;;  %v2963_v10 = vld [vmem:[#allocation9 + $0x90] ss:$8 sps:$4 sm:$0xff]  }
 0x126   :  { %1613 = vmatpush2.bf16.msra.mxu1 %v2908_v11  ;;  %1573 = vmatprep.subr.bf16.mxu0 %v2913_v12  ;;  %v3005_v11 = vld [vmem:[#allocation10 + $0xb0] ss:$8 sps:$4 sm:$0xff]   ;;  %v2968_v12 = vld [vmem:[#allocation9 + $0x84] ss:$8 sps:$4 sm:$0xff]  }
 0x127   :  { %1614 = vmatprep.subr.bf16.mxu1 %v2916_v13  ;;  %v3377_v13 = vsub.s32 0, %v226_v9 }
 0x129   :  { %1574 = vmatpush2.bf16.msra.mxu0 %v2911_v14  ;;  %v2966_v14 = vld [vmem:[#allocation9 + $0x80] ss:$8 sps:$4 sm:$0xff]  }
 0x12a   :  { %1615 = vmatpush2.bf16.msra.mxu1 %v2914_v15  ;;  %1855 = vmatprep.subr.bf16.mxu0 %v2971_v18  ;;  %v223_v15 = vld [vmem:[#allocation4] sm:$0x3] }
 0x12b   :  { %2056 = vmatprep.subr.bf16.mxu1 %v2923_v16  ;;  %v3379_v16 = vsub.s32 1, %v226_v9  ;;  %v3013_v18 = vld [vmem:[#allocation10 + $0x94] ss:$8 sps:$4 sm:$0xff]  }
 0x12c   :  { %1576 = vmatmul.mubr.bf16.vlgmr.msra.gmra.mxu0 %v2373_v17  ;;  %v228_v17 = vrot.slane %v223_v15, %v3377_v13 }
 0x12d   :  { %1617 = vmatmul.mubr.bf16.vlgmr.msra.gmra.mxu1 %v2375_v20  ;;  %1856 = vmatpush1.bf16.msra.mxu0 %v2969_v27  ;;  %v3010_v20 = vld [vmem:[#allocation10 + $0xa4] ss:$8 sps:$4 sm:$0xff]  }
 0x12e   :  { %2057 = vmatpush1.bf16.msra.mxu1 %v2921_v21  ;;  %1857 = vmatprep.subr.bf16.mxu0 %v2974_v28  ;;  %v232_v21 = vrot.slane %v223_v15, %v3379_v16  ;;  %v3023_v15 = vld [vmem:[#allocation13 + $0x60] sm:$0xff]  }
 0x12f   :  { %2058 = vmatprep.subr.bf16.mxu1 %v2926_v22  ;;  %v3008_v22 = vld [vmem:[#allocation10 + $0xa0] ss:$8 sps:$4 sm:$0xff]  }
 0x131   :  { %1858 = vmatpush1.bf16.msra.mxu0 %v2972_v29  ;;  %v3011_v29 = vld [vmem:[#allocation10 + $0x90] ss:$8 sps:$4 sm:$0xff]  }
 0x132   :  { %2059 = vmatpush1.bf16.msra.mxu1 %v2924_v23  ;;  %1859 = vmatprep.subr.bf16.mxu0 %v2977_v31 }
 0x133   :  { %2060 = vmatprep.subr.bf16.mxu1 %v2929_v24 }
 0x135   :  { %1860 = vmatpush1.bf16.msra.mxu0 %v2975_v33 }
 0x136   :  { %2061 = vmatpush1.bf16.msra.mxu1 %v2927_v25  ;;  %1861 = vmatprep.subr.bf16.mxu0 %v2980_v35 }
 0x137   :  { %2062 = vmatprep.subr.bf16.mxu1 %v2932_v26 }
 0x139   :  { %1862 = vmatpush1.bf16.msra.mxu0 %v2978_v37 }
 0x13a   :  { %2063 = vmatpush1.bf16.msra.mxu1 %v2930_v19  ;;  %1863 = vmatprep.subr.bf16.mxu0 %v2983_v39 }
 0x13b   :  { %2064 = vmatprep.subr.bf16.mxu1 %v2935_v30 }
 0x13d   :  { %1864 = vmatpush1.bf16.msra.mxu0 %v2981_v41 }
 0x13e   :  { %2065 = vmatpush1.bf16.msra.mxu1 %v2933_v32  ;;  %1865 = vmatprep.subr.bf16.mxu0 %v2986_v43 }
 0x13f   :  { %2066 = vmatprep.subr.bf16.mxu1 %v2938_v34 }
 0x141   :  { %1866 = vmatpush1.bf16.msra.mxu0 %v2984_v45 }
 0x142   :  { %2067 = vmatpush1.bf16.msra.mxu1 %v2936_v36  ;;  %1867 = vmatprep.subr.bf16.mxu0 %v2989_v47  ;;  %v3016_v36 = vld [vmem:[#allocation10 + $0x84] ss:$8 sps:$4 sm:$0xff]  }
 0x143   :  { %2068 = vmatprep.subr.bf16.mxu1 %v2941_v38  ;;  %v3014_v38 = vld [vmem:[#allocation10 + $0x80] ss:$8 sps:$4 sm:$0xff]  }
 0x145   :  { %1868 = vmatpush1.bf16.msra.mxu0 %v2987_v49  ;;  %v3017_v49 = vld [vmem:[#allocation13 + $0x78] sm:$0xff]  }
 0x146   :  { %2069 = vmatpush1.bf16.msra.mxu1 %v2939_v40  ;;  %1869 = vmatprep.subr.bf16.mxu0 %v2992_v51 }
 0x147   :  { %2070 = vmatprep.subr.bf16.mxu1 %v2944_v42 }
 0x149   :  { %1870 = vmatpush1.bf16.msra.mxu0 %v2990_v53 }
 0x14a   :  { %2071 = vmatpush1.bf16.msra.mxu1 %v2942_v44  ;;  %1871 = vmatprep.subr.bf16.mxu0 %v2995_v55 }
 0x14b   :  { %2072 = vmatprep.subr.bf16.mxu1 %v2947_v46 }
 0x14d   :  { %1872 = vmatpush2.bf16.msra.mxu0 %v2993_v57 }
 0x14e   :  { %2073 = vmatpush2.bf16.msra.mxu1 %v2945_v48  ;;  %1873 = vmatprep.subr.bf16.mxu0 %v2998_v59 }
 0x14f   :  { %2074 = vmatprep.subr.bf16.mxu1 %v2950_v50  ;;  %v781_v50 = vld [vmem:[#allocation7] sm:$0x3] }
 0x150   :  { %v786_v51 = vrot.slane %v781_v50, %v3377_v13 }
 0x151   :  { %1874 = vmatpush2.bf16.msra.mxu0 %v2996_v61 }
 0x152   :  { %2075 = vmatpush2.bf16.msra.mxu1 %v2948_v52  ;;  %1875 = vmatprep.subr.bf16.mxu0 %v3001_v63  ;;  %v790_v52 = vrot.slane %v781_v50, %v3379_v16 }
 0x153   :  { %2076 = vmatprep.subr.bf16.mxu1 %v2953_v54 }
 0x155   :  { %1876 = vmatpush2.bf16.msra.mxu0 %v2999_v1 }
 0x156   :  { %2077 = vmatpush2.bf16.msra.mxu1 %v2951_v56  ;;  %1877 = vmatprep.subr.bf16.mxu0 %v3004_v3 }
 0x157   :  { %2078 = vmatprep.subr.bf16.mxu1 %v2956_v58 }
 0x159   :  { %1878 = vmatpush2.bf16.msra.mxu0 %v3002_v6 }
 0x15a   :  { %2079 = vmatpush2.bf16.msra.mxu1 %v2954_v60  ;;  %1879 = vmatprep.subr.bf16.mxu0 %v3007_v8  ;;  %v3018_v8 = vld [vmem:[#allocation13 + $0x38] sm:$0xff]  }
 0x15b   :  { %2080 = vmatprep.subr.bf16.mxu1 %v2959_v62 }
 0x15d   :  { %1880 = vmatpush2.bf16.msra.mxu0 %v3005_v11  ;;  %v3020_v11 = vld [vmem:[#allocation13 + $0x30] sm:$0xff]  }
 0x15e   :  { %2081 = vmatpush2.bf16.msra.mxu1 %v2957_v0  ;;  %1881 = vmatprep.subr.bf16.mxu0 %v3010_v20  ;;  %v3025_v20 = vld [vmem:[#allocation13 + $0x58] sm:$0xff]  }
 0x15f   :  { %2082 = vmatprep.subr.bf16.mxu1 %v2962_v2 }
 0x161   :  { %1882 = vmatpush2.bf16.msra.mxu0 %v3008_v22  ;;  %v3027_v22 = vld [vmem:[#allocation13 + $0x50] sm:$0xff]  }
 0x162   :  { %2083 = vmatpush2.bf16.msra.mxu1 %v2960_v5  ;;  %1883 = vmatprep.subr.bf16.mxu0 %v3013_v18 }
 0x163   :  { %2084 = vmatprep.subr.bf16.mxu1 %v2965_v7 }
 0x165   :  { %1884 = vmatpush2.bf16.msra.mxu0 %v3011_v29  ;;  %v3032_v29 = vld [vmem:[#allocation13] sm:$0xff]  }
 0x166   :  { %2085 = vmatpush2.bf16.msra.mxu1 %v2963_v10  ;;  %1885 = vmatprep.subr.bf16.mxu0 %v3016_v36  ;;  %v3019_v10 = vld [vmem:[#allocation13 + $0x70] sm:$0xff]  }
 0x167   :  { %2086 = vmatprep.subr.bf16.mxu1 %v2968_v12  ;;  %v3021_v12 = vld [vmem:[#allocation13 + $0x68] sm:$0xff]  }
 0x169   :  { %1886 = vmatpush2.bf16.msra.mxu0 %v3014_v38 }
 0x16a   :  { %2087 = vmatpush2.bf16.msra.mxu1 %v2966_v14  ;;  %2586 = vmatprep.subr.bf16.mxu0 %v3017_v49  ;;  %v3022_v14 = vld [vmem:[#allocation13 + $0x28] sm:$0xff]  }
 0x16c   :  { %v603_v23 = vpop.f32.mrf.mxu0 }
 0x16d   :  { %v644_v24 = vpop.f32.mrf.mxu1  ;;  %v604_v25 = vadd.f32 %v603_v23, %v228_v17  ;;  %v3024_v17 = vld [vmem:[#allocation13 + $0x20] sm:$0xff]   ;;  %v3028_v23 = vld [vmem:[#allocation13 + $0x10] sm:$0xff]  }
 0x16e   :  { %v605_v26 = vpop.f32.mrf.mxu0 }
 0x16f   :  { %v646_v27 = vpop.f32.mrf.mxu1  ;;  %v645_v28 = vadd.f32 %v644_v24, %v604_v25  ;;  %v606_v19 = vadd.f32 %v605_v26, %v232_v21  ;;  %v3026_v21 = vld [vmem:[#allocation13 + $0x18] sm:$0xff]   ;;  %v3029_v26 = vld [vmem:[#allocation13 + $0x48] sm:$0xff]  }
 0x170   :  { %v607_v30 = vpop.f32.mrf.mxu0 }
 0x171   :  { %v648_v31 = vpop.f32.mrf.mxu1  ;;  %v647_v32 = vadd.f32 %v646_v27, %v606_v19  ;;  %v651_v33 = vmax.f32 %v645_v28, 0.0  ;;  %v3030_v27 = vld [vmem:[#allocation13 + $0x8] sm:$0xff]   ;;  %v3031_v19 = vld [vmem:[#allocation13 + $0x40] sm:$0xff]   ;;  %v2097_v30 = vld [vmem:[#allocation12] sm:$0x3] }
 0x172   :  { %v608_v34 = vpop.f32.mrf.mxu0  ;;  %v2102_v31 = vrot.slane %v2097_v30, %v3377_v13 }
 0x173   :  { %v649_v35 = vpop.f32.mrf.mxu1  ;;  %v652_v37 = vmax.f32 %v647_v32, 0.0  ;;  %v1627_v40 = vpack.c.bf16 %v651_v33, %v651_v33  ;;  %v2106_v34 = vrot.slane %v2097_v30, %v3379_v16 }
 0x175   :  { %v1628_v39 = vpack.c.bf16 %v652_v37, %v652_v37 }
 0x177   :  { %2088 = vmatprep.mubr.bf16.mxu1 %v1628_v39 }
 0x178   :  { %2089 = vmatmul.mubr.bf16.vlgmr.msra.gmra.mxu1 %v1627_v40 }
 0x1ac   :  { %v1495_v41 = vpop.f32.mrf.mxu0 }
 0x1ad   :  { %v1536_v42 = vpop.f32.mrf.mxu1  ;;  %v1496_v53 = vadd.f32 %v1495_v41, %v786_v51 }
 0x1ae   :  { %v1497_v43 = vpop.f32.mrf.mxu0 }
 0x1af   :  { %v1538_v44 = vpop.f32.mrf.mxu1  ;;  %v1498_v54 = vadd.f32 %v1497_v43, %v790_v52  ;;  %v1537_v55 = vadd.f32 %v1536_v42, %v1496_v53 }
 0x1b0   :  { %v1499_v45 = vpop.f32.mrf.mxu0 }
 0x1b1   :  { %v1540_v46 = vpop.f32.mrf.mxu1  ;;  %v1539_v58 = vadd.f32 %v1538_v44, %v1498_v54 }
 0x1b2   :  { %v1500_v47 = vpop.f32.mrf.mxu0  ;;  %v2569_v46 = vld [vmem:[#allocation15] ss:$0 sm:$0xff] }
 0x1b3   :  { %v1541_v48 = vpop.f32.mrf.mxu1 }
 0x1ec   :  { %v1577_v56 = vpop.f32.mrf.mxu0 }
 0x1ed   :  { %v1618_v57 = vpop.f32.mrf.mxu1  ;;  %v1578_v59 = vadd.f32 %v1577_v56, %v1537_v55 }
 0x1ee   :  { %v1579_v60 = vpop.f32.mrf.mxu0 }
 0x1ef   :  { %v1620_v61 = vpop.f32.mrf.mxu1  ;;  %v1619_v62 = vadd.f32 %v1618_v57, %v1578_v59  ;;  %v1580_v63 = vadd.f32 %v1579_v60, %v1539_v58 }
 0x1f0   :  { %v1581_v0 = vpop.f32.mrf.mxu0 }
 0x1f1   :  { %v1622_v1 = vpop.f32.mrf.mxu1  ;;  %v1621_v2 = vadd.f32 %v1620_v61, %v1580_v63  ;;  %v1625_v3 = vmax.f32 %v1619_v62, 0.0 }
 0x1f2   :  { %v1582_v4 = vpop.f32.mrf.mxu0 }
 0x1f3   :  { %v1623_v5 = vpop.f32.mrf.mxu1  ;;  %v1626_v6 = vmax.f32 %v1621_v2, 0.0  ;;  %v1661_v9 = vpack.c.bf16 %v1625_v3, %v1625_v3 }
 0x1f5   :  { %v1662_v7 = vpack.c.bf16 %v1626_v6, %v1626_v6 }
 0x1f7   :  { %1887 = vmatprep.mubr.bf16.mxu0 %v1662_v7 }
 0x1f8   :  { %1888 = vmatmul.mubr.bf16.vlgmr.msra.gmra.mxu0 %v1661_v9 }
 0x1f9   :  { %2587 = vmatpush3.bf16.msra.mxu0 %v3018_v8 }
 0x1fa   :  { %2588 = vmatprep.subr.bf16.mxu0 %v3019_v10 }
 0x1fd   :  { %2589 = vmatpush3.bf16.msra.mxu0 %v3020_v11 }
 0x1fe   :  { %2590 = vmatprep.subr.bf16.mxu0 %v3021_v12 }
 0x201   :  { %2591 = vmatpush3.bf16.msra.mxu0 %v3022_v14 }
 0x202   :  { %2592 = vmatprep.subr.bf16.mxu0 %v3023_v15 }
 0x205   :  { %2593 = vmatpush3.bf16.msra.mxu0 %v3024_v17 }
 0x206   :  { %2594 = vmatprep.subr.bf16.mxu0 %v3025_v20 }
 0x209   :  { %2595 = vmatpush3.bf16.msra.mxu0 %v3026_v21 }
 0x20a   :  { %2596 = vmatprep.subr.bf16.mxu0 %v3027_v22 }
 0x20d   :  { %2597 = vmatpush3.bf16.msra.mxu0 %v3028_v23 }
 0x20e   :  { %2598 = vmatprep.subr.bf16.mxu0 %v3029_v26 }
 0x211   :  { %2599 = vmatpush3.bf16.msra.mxu0 %v3030_v27 }
 0x212   :  { %2600 = vmatprep.subr.bf16.mxu0 %v3031_v19 }
 0x215   :  { %2601 = vmatpush3.bf16.msra.mxu0 %v3032_v29 }
 0x238   :  { %v2090_v24 = vpop.f32.mrf.mxu1 }
 0x23a   :  { %v2092_v25 = vpop.f32.mrf.mxu1 }
 0x23c   :  { %v2094_v18 = vpop.f32.mrf.mxu1 }
 0x23e   :  { %v2095_v28 = vpop.f32.mrf.mxu1 }
 0x2b8   :  { %v1889_v32 = vpop.f32.mrf.mxu0 }
 0x2b9   :  { %v2091_v33 = vadd.f32 %v2090_v24, %v1889_v32 }
 0x2ba   :  { %v1891_v35 = vpop.f32.mrf.mxu0 }
 0x2bb   :  { %v2109_v36 = vadd.f32 %v2102_v31, %v2091_v33  ;;  %v2093_v37 = vadd.f32 %v2092_v25, %v1891_v35 }
 0x2bc   :  { %v1893_v38 = vpop.f32.mrf.mxu0 }
 0x2bd   :  { %v2110_v39 = vadd.f32 %v2106_v34, %v2093_v37  ;;  %v2111_v40 = vmax.f32 %v2109_v36, 0.0 }
 0x2be   :  { %v1894_v41 = vpop.f32.mrf.mxu0 }
 0x2bf   :  { %v2112_v42 = vmax.f32 %v2110_v39, 0.0  ;;  %v2113_v44 = vpack.c.bf16 %v2111_v40, %v2111_v40 }
 0x2c1   :  { %v2114_v43 = vpack.c.bf16 %v2112_v42, %v2112_v42 }
 0x2c3   :  { %2282 = vmatprep.mubr.bf16.mxu0 %v2114_v43 }
 0x2c4   :  { %2283 = vmatmul.mubr.bf16.vlgmr.msra.gmra.mxu0 %v2113_v44 }
 0x384   :  { %v2602_v45 = vpop.f32.mrf.mxu0 }
 0x386   :  { %v2603_v47 = vpop.f32.mrf.mxu0 }
 0x387   :  { %v2604_v13 = vadd.f32 %v2603_v47, %v2602_v45 }
 0x388   :  { %v2605_v48 = vpop.f32.mrf.mxu0 }
 0x389   :  { %v2285_v49 = vadd.f32 %v2604_v13, %v2569_v46 }
 0x38a   :  { %v2606_v50 = vpop.f32.mrf.mxu0 }
 0x38b   :  { %v2290_v16 = vpack.c.bf16 %v2285_v49, %v2285_v49 }
 0x38d   :  { %2291 = vst [vmem:[%s3401_s11] sm:$0xf] %v2290_v16 }
 0x38e   :  { %2296 = vsyncpa [#allocation3], 1 }
 0x38f   :  { %2297 = vsyncpa [#allocation5], 1 }
 0x390   :  { %2298 = vsyncpa [#allocation8], 1 }
 0x391   :  { %2299 = vsyncpa [#allocation11], 1 }
 0x392   :  { %2300 = vsyncpa [#allocation14], 1 }

</bundles_post_ra>
